<compile_context>
chip_gen: v7x
topology: tpu7x:2x2x1
jax: 0.10.0
libtpu: 0.0.40
codegen_flags: <defaults>
</compile_context>

<pallas_src>
import functools
import math

import jax
import jax.numpy as jnp
from jax.experimental import pallas as pl
from jax.experimental.pallas import tpu as pltpu

BN_EPS = 1e-5


def _round_up(x, m):
    return ((x + m - 1) // m) * m


def actor_kernel(state_ref, w1_ref, b1_ref, gamma_ref, beta_ref,
                 w2_ref, b2_ref, w3_ref, b3_ref, out_ref, *, batch_real):
    x = state_ref[...]                                            # (Bp, Sp) bf16

    # ---- fc1 : bf16 x bf16 matmul on the MXU, f32 accumulate ----
    h1 = jnp.dot(x, w1_ref[...], preferred_element_type=jnp.float32)
    h1 = h1 + b1_ref[...]                                         # (Bp, F1p) f32

    # ---- BatchNorm1d (training mode: batch stats, biased variance) ----
    bp = h1.shape[0]
    inv_n = jnp.float32(1.0 / batch_real)
    if batch_real != bp:
        # Padded batch rows carry the fc1 bias; mask them out of the stats.
        row = jax.lax.broadcasted_iota(jnp.int32, h1.shape, 0)
        valid = row < batch_real
        h1_stats = jnp.where(valid, h1, 0.0)
    else:
        valid = None
        h1_stats = h1
    mean = jnp.sum(h1_stats, axis=0, keepdims=True) * inv_n       # (1, F1p)
    d = h1 - mean
    if valid is not None:
        d = jnp.where(valid, d, 0.0)
    var = jnp.sum(d * d, axis=0, keepdims=True) * inv_n           # (1, F1p)

    # Fold BN into a single scale/shift over the big activation.
    scale = jax.lax.rsqrt(var + BN_EPS) * gamma_ref[...]          # (1, F1p)
    shift = beta_ref[...] - mean * scale                          # (1, F1p)
    a1 = jnp.maximum(h1 * scale + shift, 0.0)                     # relu

    # ---- fc2 + relu ----
    h2 = jnp.dot(a1.astype(w2_ref.dtype), w2_ref[...],
                 preferred_element_type=jnp.float32) + b2_ref[...]
    a2 = jnp.maximum(h2, 0.0)

    # ---- fc3 + tanh (lane-dense padded output, sliced in the wrapper) ----
    h3 = jnp.dot(a2.astype(w3_ref.dtype), w3_ref[...],
                 preferred_element_type=jnp.float32) + b3_ref[...]
    out_ref[...] = jnp.tanh(h3)


def actor_forward(state, params):
    """state: (B, state_size) f32.  Returns (B, action_size) f32 actions."""
    w1, b1 = params["w1"], params["b1"]
    gamma, beta = params["gamma"], params["beta"]
    w2, b2 = params["w2"], params["b2"]
    w3, b3 = params["w3"], params["b3"]
    action_size = params["action_size"]

    B, S = state.shape
    Sp = w1.shape[0]                 # padded state dim
    Ap = w3.shape[1]                 # padded (lane-dense) action dim
    Bp = _round_up(B, 8)             # sublane-aligned batch

    state_p = jnp.zeros((Bp, Sp), jnp.bfloat16).at[:B, :S].set(
        state.astype(jnp.bfloat16))

    vmem = pl.BlockSpec(memory_space=pltpu.MemorySpace.VMEM)
    out_p = pl.pallas_call(
        functools.partial(actor_kernel, batch_real=B),
        out_shape=jax.ShapeDtypeStruct((Bp, Ap), jnp.float32),
        in_specs=[vmem] * 9,
        out_specs=vmem,
    )(state_p, w1, b1, gamma, beta, w2, b2, w3, b3)

    return out_p[:B, :action_size]


def init_actor_params(key, state_size, action_size, fc1_units=400, fc2_units=300):
    """Mirrors the PyTorch module's reset_parameters; pads dims for the TPU."""
    k1, k2, k3, k4, k5, k6 = jax.random.split(key, 6)

    Sp = _round_up(state_size, 8)       # sublane-align fc1 contraction dim
    F1 = _round_up(fc1_units, 128)      # 400 -> 512 (lane-aligned)
    F2 = _round_up(fc2_units, 128)      # 300 -> 384
    Ap = _round_up(action_size, 128)    # 4   -> 128 (lane-dense output)

    def uniform(k, shape, lim):
        return jax.random.uniform(k, shape, jnp.float32, -lim, lim)

    def pad2(a, rows, cols):
        return jnp.zeros((rows, cols), a.dtype).at[:a.shape[0], :a.shape[1]].set(a)

    # hidden_init in the reference uses weight.size()[0] == out_features
    lim1 = 1.0 / math.sqrt(fc1_units)
    lim2 = 1.0 / math.sqrt(fc2_units)
    lim3 = 0.003
    # PyTorch default Linear bias init: U(-1/sqrt(in_features), 1/sqrt(in_features))
    blim1 = 1.0 / math.sqrt(state_size)
    blim2 = 1.0 / math.sqrt(fc1_units)
    blim3 = 1.0 / math.sqrt(fc2_units)

    # weights stored as (in, out)  [transpose of PyTorch (out, in)], zero-padded
    w1 = pad2(uniform(k1, (state_size, fc1_units), lim1), Sp, F1)
    b1 = pad2(uniform(k2, (1, fc1_units), blim1), 1, F1)
    gamma = pad2(jnp.ones((1, fc1_units), jnp.float32), 1, F1)
    beta = jnp.zeros((1, F1), jnp.float32)
    w2 = pad2(uniform(k3, (fc1_units, fc2_units), lim2), F1, F2)
    b2 = pad2(uniform(k4, (1, fc2_units), blim2), 1, F2)
    w3 = pad2(uniform(k5, (fc2_units, action_size), lim3), F2, Ap)
    b3 = pad2(uniform(k6, (1, action_size), blim3), 1, Ap)

    return {
        "w1": w1.astype(jnp.bfloat16), "b1": b1,
        "gamma": gamma, "beta": beta,
        "w2": w2.astype(jnp.bfloat16), "b2": b2,
        "w3": w3.astype(jnp.bfloat16), "b3": b3,
        "state_size": state_size, "action_size": action_size,
    }


def actor_reference(state, params):
    """Pure-JAX f32 reference (same bf16 weight values, f32 math)."""
    Sp = params["w1"].shape[0]
    x = jnp.zeros((state.shape[0], Sp), jnp.float32).at[:, :state.shape[1]].set(state)
    h1 = x @ params["w1"].astype(jnp.float32) + params["b1"]
    mean = jnp.mean(h1, axis=0, keepdims=True)
    var = jnp.mean((h1 - mean) ** 2, axis=0, keepdims=True)
    a1 = jnp.maximum((h1 - mean) * jax.lax.rsqrt(var + BN_EPS)
                     * params["gamma"] + params["beta"], 0.0)
    h2 = a1 @ params["w2"].astype(jnp.float32) + params["b2"]
    a2 = jnp.maximum(h2, 0.0)
    h3 = a2 @ params["w3"].astype(jnp.float32) + params["b3"]
    return jnp.tanh(h3)[:, :params["action_size"]]


if __name__ == "__main__":
    # Shapes consistent with the module defaults; batch raised to fill MXU rows.
    batch = 128
    state_size = 16
    action_size = 4
    fc1_units = 400
    fc2_units = 300

    key = jax.random.PRNGKey(0)
    pkey, skey = jax.random.split(key)
    params = init_actor_params(pkey, state_size, action_size, fc1_units, fc2_units)
    state = jax.random.normal(skey, (batch, state_size), jnp.float32)

    out = jax.block_until_ready(actor_forward(state, params))
    assert out.shape == (batch, action_size)
    assert bool(jnp.all(jnp.isfinite(out)))

    ref = actor_reference(state, params)
    assert bool(jnp.max(jnp.abs(out - ref)) < 5e-2), "mismatch vs f32 reference"
    print("KERNEL_OK")
</pallas_src>

<mosaic_0001>
module attributes {stable_mosaic.version = 11 : i64} {
  func.func @actor_kernel(%arg0: memref<128x16xbf16, #tpu.memory_space<vmem>>, %arg1: memref<16x512xbf16, #tpu.memory_space<vmem>>, %arg2: memref<1x512xf32, #tpu.memory_space<vmem>>, %arg3: memref<1x512xf32, #tpu.memory_space<vmem>>, %arg4: memref<1x512xf32, #tpu.memory_space<vmem>>, %arg5: memref<512x384xbf16, #tpu.memory_space<vmem>>, %arg6: memref<1x384xf32, #tpu.memory_space<vmem>>, %arg7: memref<384x128xbf16, #tpu.memory_space<vmem>>, %arg8: memref<1x128xf32, #tpu.memory_space<vmem>>, %arg9: memref<128x128xf32, #tpu.memory_space<vmem>>) attributes {dimension_semantics = [], scalar_prefetch = 0 : i64, scratch_operands = 0 : i64, tpu.core_type = #tpu.core_type<tc>} {
    %c0 = arith.constant 0 : index
    %c0_0 = arith.constant 0 : index
    %0 = vector.load %arg0[%c0, %c0_0] : memref<128x16xbf16, #tpu.memory_space<vmem>>, vector<128x16xbf16>
    %c0_1 = arith.constant 0 : index
    %c0_2 = arith.constant 0 : index
    %1 = vector.load %arg1[%c0_1, %c0_2] : memref<16x512xbf16, #tpu.memory_space<vmem>>, vector<16x512xbf16>
    %cst = arith.constant dense<0.000000e+00> : vector<128x512xf32>
    %2 = tpu.matmul %0, %1, %cst {dimension_numbers = #tpu.dot_dimension_numbers<[1], [0], [0], [1], [0, 0, 1, 1], [], []>} : vector<128x16xbf16>, vector<16x512xbf16>, vector<128x512xf32> -> vector<128x512xf32>
    %c0_3 = arith.constant 0 : index
    %c0_4 = arith.constant 0 : index
    %3 = vector.load %arg2[%c0_3, %c0_4] : memref<1x512xf32, #tpu.memory_space<vmem>>, vector<1x512xf32>
    %4 = vector.broadcast %3 : vector<1x512xf32> to vector<128x512xf32>
    %5 = arith.addf %2, %4 : vector<128x512xf32>
    %cst_5 = arith.constant dense<0.000000e+00> : vector<512xf32>
    %6 = vector.multi_reduction <add>, %5, %cst_5 [0] : vector<128x512xf32> to vector<512xf32>
    %7 = vector.shape_cast %6 : vector<512xf32> to vector<1x512xf32>
    %cst_6 = arith.constant 7.812500e-03 : f32
    %8 = vector.broadcast %cst_6 : f32 to vector<1x512xf32>
    %9 = arith.mulf %7, %8 : vector<1x512xf32>
    %10 = vector.broadcast %9 : vector<1x512xf32> to vector<128x512xf32>
    %11 = arith.subf %5, %10 : vector<128x512xf32>
    %12 = arith.mulf %11, %11 : vector<128x512xf32>
    %cst_7 = arith.constant dense<0.000000e+00> : vector<512xf32>
    %13 = vector.multi_reduction <add>, %12, %cst_7 [0] : vector<128x512xf32> to vector<512xf32>
    %14 = vector.shape_cast %13 : vector<512xf32> to vector<1x512xf32>
    %cst_8 = arith.constant 7.812500e-03 : f32
    %15 = vector.broadcast %cst_8 : f32 to vector<1x512xf32>
    %16 = arith.mulf %14, %15 : vector<1x512xf32>
    %cst_9 = arith.constant 9.99999974E-6 : f32
    %17 = vector.broadcast %cst_9 : f32 to vector<1x512xf32>
    %18 = arith.addf %16, %17 : vector<1x512xf32>
    %19 = math.rsqrt %18 : vector<1x512xf32>
    %c0_10 = arith.constant 0 : index
    %c0_11 = arith.constant 0 : index
    %20 = vector.load %arg3[%c0_10, %c0_11] : memref<1x512xf32, #tpu.memory_space<vmem>>, vector<1x512xf32>
    %21 = arith.mulf %19, %20 : vector<1x512xf32>
    %c0_12 = arith.constant 0 : index
    %c0_13 = arith.constant 0 : index
    %22 = vector.load %arg4[%c0_12, %c0_13] : memref<1x512xf32, #tpu.memory_space<vmem>>, vector<1x512xf32>
    %23 = arith.mulf %9, %21 : vector<1x512xf32>
    %24 = arith.subf %22, %23 : vector<1x512xf32>
    %25 = vector.broadcast %21 : vector<1x512xf32> to vector<128x512xf32>
    %26 = arith.mulf %5, %25 : vector<128x512xf32>
    %27 = vector.broadcast %24 : vector<1x512xf32> to vector<128x512xf32>
    %28 = arith.addf %26, %27 : vector<128x512xf32>
    %cst_14 = arith.constant 0.000000e+00 : f32
    %29 = vector.broadcast %cst_14 : f32 to vector<128x512xf32>
    %30 = arith.maximumf %28, %29 : vector<128x512xf32>
    %31 = arith.truncf %30 : vector<128x512xf32> to vector<128x512xbf16>
    %c0_15 = arith.constant 0 : index
    %c0_16 = arith.constant 0 : index
    %32 = vector.load %arg5[%c0_15, %c0_16] : memref<512x384xbf16, #tpu.memory_space<vmem>>, vector<512x384xbf16>
    %cst_17 = arith.constant dense<0.000000e+00> : vector<128x384xf32>
    %33 = tpu.matmul %31, %32, %cst_17 {dimension_numbers = #tpu.dot_dimension_numbers<[1], [0], [0], [1], [0, 0, 1, 1], [], []>} : vector<128x512xbf16>, vector<512x384xbf16>, vector<128x384xf32> -> vector<128x384xf32>
    %c0_18 = arith.constant 0 : index
    %c0_19 = arith.constant 0 : index
    %34 = vector.load %arg6[%c0_18, %c0_19] : memref<1x384xf32, #tpu.memory_space<vmem>>, vector<1x384xf32>
    %35 = vector.broadcast %34 : vector<1x384xf32> to vector<128x384xf32>
    %36 = arith.addf %33, %35 : vector<128x384xf32>
    %cst_20 = arith.constant 0.000000e+00 : f32
    %37 = vector.broadcast %cst_20 : f32 to vector<128x384xf32>
    %38 = arith.maximumf %36, %37 : vector<128x384xf32>
    %39 = arith.truncf %38 : vector<128x384xf32> to vector<128x384xbf16>
    %c0_21 = arith.constant 0 : index
    %c0_22 = arith.constant 0 : index
    %40 = vector.load %arg7[%c0_21, %c0_22] : memref<384x128xbf16, #tpu.memory_space<vmem>>, vector<384x128xbf16>
    %cst_23 = arith.constant dense<0.000000e+00> : vector<128x128xf32>
    %41 = tpu.matmul %39, %40, %cst_23 {dimension_numbers = #tpu.dot_dimension_numbers<[1], [0], [0], [1], [0, 0, 1, 1], [], []>} : vector<128x384xbf16>, vector<384x128xbf16>, vector<128x128xf32> -> vector<128x128xf32>
    %c0_24 = arith.constant 0 : index
    %c0_25 = arith.constant 0 : index
    %42 = vector.load %arg8[%c0_24, %c0_25] : memref<1x128xf32, #tpu.memory_space<vmem>>, vector<1x128xf32>
    %43 = vector.broadcast %42 : vector<1x128xf32> to vector<128x128xf32>
    %44 = arith.addf %41, %43 : vector<128x128xf32>
    %45 = math.tanh %44 : vector<128x128xf32>
    %c0_26 = arith.constant 0 : index
    %c0_27 = arith.constant 0 : index
    %46 = vector.load %arg9[%c0_26, %c0_27] : memref<128x128xf32, #tpu.memory_space<vmem>>, vector<128x128xf32>
    tpu.vector_store %arg9[%c0_26, %c0_27], %45 {strides = array<i32>} : memref<128x128xf32, #tpu.memory_space<vmem>>, vector<128x128xf32>,
    return
  }
}

</mosaic_0001>

<bundles_post_ra>
// kernel: tpu_custom_call.1
= control target key start
LH: loop header
LB: loop body
LE: loop exit
PB: predicated region body
PF: predicated region fallthrough
CT: control target
= control target key end

     0   :  { %14 = vsyncpa [#allocation3], 0  ;;  %s4534_s0 = inlined_call_operand.vmem [shape: bf16[128,16], index: 0, kind: input, shape index: {}]   ;;  %s4535_s1 = inlined_call_operand.vmem [shape: bf16[16,512], index: 1, kind: input, shape index: {}]   ;;  %s4536_s2 = inlined_call_operand.vmem [shape: f32[1,512], index: 2, kind: input, shape index: {}]   ;;  %s4537_s3 = inlined_call_operand.vmem [shape: f32[1,512], index: 3, kind: input, shape index: {}]   ;;  %s4538_s4 = inlined_call_operand.vmem [shape: f32[1,512], index: 4, kind: input, shape index: {}]   ;;  %s4539_s5 = inlined_call_operand.hbm [shape: bf16[512,384], index: 5, kind: input, shape index: {}]   ;;  %s4540_s6 = inlined_call_operand.vmem [shape: f32[1,384], index: 6, kind: input, shape index: {}]   ;;  %s4541_s7 = inlined_call_operand.hbm [shape: bf16[384,128], index: 7, kind: input, shape index: {}]   ;;  %s4542_s8 = inlined_call_operand.vmem [shape: f32[1,128], index: 8, kind: input, shape index: {}]   ;;  %s4543_s9 = inlined_call_operand.hbm [shape: f32[128,128], index: 9, kind: output, shape index: {}]  }
   0x1   :  { %15 = vsyncpa [#allocation6], 0 }
   0x2   :  { %16 = vsyncpa [#allocation4], 0  ;;  %s3383_s30 = smov [#allocation2]   ;;  %s3311_s13 = scalar_lea.hbm %s4539_s5, 12288 }
   0x3   :  { %s32_s10 = sshll.u32 %s3383_s30, 4  ;;  %p3312_p0 = scmp.ne.s32.totalorder %s4539_s5, %s3311_s13  ;;  %s33_s10 = int_to_ptr.vmem [resolvable:$true] %s32_s10 }
   0x4   :  { %p3315_p1 = scmp.lt.u32.totalorder %s3311_s13, %s4539_s5 }
   0x6   :  { %p3317_p2 = pnand %p3315_p1, %p3312_p0 }
   0x8   :  { %3320 = shalt.err (!%p3317_p2)
}
   0x9   :  { %s3321_s18 = scalar_lea.vmem %s33_s10, 12288  ;;  %p3326_p4 = scmp.lt.s32.totalorder %s33_s10, %s33_s10 }
   0xa   :  { %p3322_p3 = scmp.ne.s32.totalorder %s33_s10, %s3321_s18  ;;  %p3327_p5 = scmp.lt.s32.totalorder %s3321_s18, %s3321_s18 }
   0xc   :  { %p3328_p6 = por %p3327_p5, %p3326_p4 }
   0xe   :  { %p3329_p7 = pnand %p3328_p6, %p3322_p3 }
  0x10   :  { %3332 = shalt.err (!%p3329_p7)
}
  0x11   :  { %s3384_s19 = smov 192   ;;  %s3385_s20 = smov 12  }
  0x12   :  { %38 = dma.hbm_to_vmem [thread:$0]  %s4539_s5, 12288, %s33_s10, [#allocation3], %s3384_s19, %s3384_s19, %s3385_s20  }
  0x13   :  { %s3386_s23 = smov [#allocation5]   ;;  %s3333_s27 = scalar_lea.hbm %s4541_s7, 3072 }
  0x14   :  { %s46_s24 = sshll.u32 %s3386_s23, 4  ;;  %p3334_p8 = scmp.ne.s32.totalorder %s4541_s7, %s3333_s27  ;;  %s47_s24 = int_to_ptr.vmem [resolvable:$true] %s46_s24 }
  0x15   :  { %p3337_p9 = scmp.lt.u32.totalorder %s3333_s27, %s4541_s7 }
  0x17   :  { %p3339_p10 = pnand %p3337_p9, %p3334_p8 }
  0x19   :  { %3342 = shalt.err (!%p3339_p10)
}
  0x1a   :  { %s3343_s12 = scalar_lea.vmem %s47_s24, 3072  ;;  %p3348_p12 = scmp.lt.s32.totalorder %s47_s24, %s47_s24 }
  0x1b   :  { %p3344_p11 = scmp.ne.s32.totalorder %s47_s24, %s3343_s12  ;;  %p3349_p13 = scmp.lt.s32.totalorder %s3343_s12, %s3343_s12 }
  0x1d   :  { %p3350_p0 = por %p3349_p13, %p3348_p12 }
  0x1f   :  { %p3351_p1 = pnand %p3350_p0, %p3344_p11 }
  0x21   :  { %3354 = shalt.err (!%p3351_p1)
}
  0x22   :  { %s3387_s5 = smov 64   ;;  %s3388_s10 = smov 4  }
  0x23   :  { %52 = dma.hbm_to_vmem [thread:$0]  %s4541_s7, 3072, %s47_s24, [#allocation6], %s3387_s5, %s3387_s5, %s3388_s10  }
  0x24   :  { %3377 = dma.done.wait [#allocation3], 12288  }
  0x25   :  { %3378 = vsyncadd [#allocation3], 4294955008 }
  0x26   :  { %3379 = dma.done.wait [#allocation6], 3072  }
  0x27   :  { %3380 = vsyncadd [#allocation6], 4294964224  ;;  %v3389_v0 = vmov 0   ;;  %v3105_v1 = vld [vmem:[%s4535_s1 + $0x4] ss:$16 sps:$4 sm:$0xff]   ;;  %vm164_vm0 = vcmask 130048   ;;  %v84_v17 = vlaneseq }
  0x28   :  { %221 = vmatprep.mubr.bf16.mxu0 %v3389_v0  ;;  %334 = vmatprep.mubr.bf16.mxu1 %v3389_v0  ;;  %v3107_v2 = vld [vmem:[%s4535_s1 + $0xc] ss:$16 sps:$4 sm:$0xff]   ;;  %v3109_v3 = vld [vmem:[%s4535_s1] ss:$16 sps:$4 sm:$0xff]   ;;  %v3110_v4 = vld [vmem:[%s4535_s1 + $0x8] ss:$16 sps:$4 sm:$0xff]  }
  0x29   :  { %189 = vmatprep.subr.bf16.mxu0 %v3105_v1  ;;  %302 = vmatprep.subr.bf16.mxu1 %v3107_v2  ;;  %v3111_v5 = vld [vmem:[%s4534_s0] sm:$0xff]   ;;  %v3112_v6 = vld [vmem:[%s4534_s0 + $0x8] sm:$0xff]   ;;  %v3113_v7 = vld [vmem:[%s4534_s0 + $0x10] sm:$0xff]   ;;  %v3520_v23 = vshrl.u32 %v84_v17, 7 }
  0x2a   :  { %190 = vmatpush1.bf16.msra.mxu0 %v3109_v3  ;;  %303 = vmatpush1.bf16.msra.mxu1 %v3110_v4  ;;  %v3114_v8 = vld [vmem:[%s4534_s0 + $0x18] sm:$0xff]   ;;  %v3115_v9 = vld [vmem:[%s4534_s0 + $0x20] sm:$0xff]   ;;  %v3116_v10 = vld [vmem:[%s4534_s0 + $0x28] sm:$0xff]  }
  0x2b   :  { %v3117_v11 = vld [vmem:[%s4534_s0 + $0x30] sm:$0xff]   ;;  %v3118_v12 = vld [vmem:[%s4534_s0 + $0x38] sm:$0xff]   ;;  %4621 = vst [vmem:[#allocation11_spill] sm:$0xff] %v3520_v23  ;;  %v3119_v24 = vld [vmem:[#allocation2] ss:$12 sps:$4 sm:$0xff]   ;;  %v3523_v30 = vsub.s32 0, %v3520_v23 }
  0x2c   :  { %v3121_v22 = vld [vmem:[#allocation2 + $0x4] ss:$12 sps:$4 sm:$0xff]   ;;  %v3125_v29 = vld [vmem:[#allocation2 + $0x1c] ss:$12 sps:$4 sm:$0xff]   ;;  %v82_v34 = vld [vmem:[%s4536_s2] sm:$0xf] }
  0x2d   :  { %2653 = vmatmul.mubr.msk.bf16.vlgmr.msra.gmra.mrb[0].mxu0 %vm164_vm0, %v3111_v5  ;;  %2661 = vmatmul.mubr.msk.bf16.vlgmr.msra.gmra.mrb[0].mxu1 %vm164_vm0, %v3111_v5  ;;  %4622 = vst [vmem:[#allocation12_spill] sm:$0xff] %v3523_v30  ;;  %v3123_v33 = vld [vmem:[#allocation2 + $0x18] ss:$12 sps:$4 sm:$0xff]   ;;  %v3529_v35 = vsub.s32 2, %v3520_v23  ;;  %v3532_v36 = vsub.s32 1, %v3520_v23  ;;  %v3535_v39 = vsub.s32 3, %v3520_v23  ;;  %v3538_v41 = vrot.slane %v82_v34, %v3523_v30 }
  0x2e   :  { %231 = vmatprep.mubr.bf16.mxu0 %v3389_v0  ;;  %344 = vmatprep.mubr.bf16.mxu1 %v3389_v0  ;;  %v3129_v40 = vld [vmem:[#allocation2 + $0x34] ss:$12 sps:$4 sm:$0xff]   ;;  %v3127_v42 = vld [vmem:[#allocation2 + $0x30] ss:$12 sps:$4 sm:$0xff]   ;;  %v3133_v53 = vld [vmem:[#allocation2 + $0x4c] ss:$12 sps:$4 sm:$0xff]  }
  0x2f   :  { %1706 = vmatprep.subr.bf16.mxu0 %v3121_v22  ;;  %4623 = vst [vmem:[#allocation13_spill] sm:$0xff] %v3529_v35  ;;  %4624 = vst [vmem:[#allocation14_spill] sm:$0xff] %v3532_v36  ;;  %v3541_v43 = vrot.slane %v82_v34, %v3529_v35  ;;  %v3544_v44 = vrot.slane %v82_v34, %v3532_v36  ;;  %v3547_v45 = vrot.slane %v82_v34, %v3535_v39  ;;  %v3131_v59 = vld [vmem:[#allocation2 + $0x48] ss:$12 sps:$4 sm:$0xff]  }
  0x30   :  { %1707 = vmatpush1.bf16.msra.mxu0 %v3119_v24  ;;  %4625 = vst [vmem:[#allocation15_spill] sm:$0xff] %v3535_v39 }
  0x31   :  { %1708 = vmatprep.subr.bf16.mxu0 %v3125_v29 }
  0x34   :  { %1709 = vmatpush1.bf16.msra.mxu0 %v3123_v33 }
  0x35   :  { %2654 = vmatmul.mubr.msk.bf16.gmra.mrb[4].mxu0 %vm164_vm0, %v3112_v6  ;;  %2662 = vmatmul.mubr.msk.bf16.gmra.mrb[4].mxu1 %vm164_vm0, %v3112_v6 }
  0x36   :  { %241 = vmatprep.mubr.bf16.mxu0 %v3389_v0  ;;  %354 = vmatprep.mubr.bf16.mxu1 %v3389_v0 }
  0x37   :  { %1710 = vmatprep.subr.bf16.mxu0 %v3129_v40 }
  0x38   :  { %1711 = vmatpush1.bf16.msra.mxu0 %v3127_v42 }
  0x39   :  { %1712 = vmatprep.subr.bf16.mxu0 %v3133_v53 }
  0x3c   :  { %1713 = vmatpush1.bf16.msra.mxu0 %v3131_v59  ;;  %v3145_v59 = vld [vmem:[#allocation2 + $0x94] ss:$12 sps:$4 sm:$0xff]  }
  0x3d   :  { %2655 = vmatmul.mubr.msk.bf16.gmra.mrb[8].mxu0 %vm164_vm0, %v3113_v7  ;;  %2663 = vmatmul.mubr.msk.bf16.gmra.mrb[8].mxu1 %vm164_vm0, %v3113_v7  ;;  %v3137_v7 = vld [vmem:[#allocation2 + $0x64] ss:$12 sps:$4 sm:$0xff]  }
  0x3e   :  { %251 = vmatprep.mubr.bf16.mxu0 %v3389_v0  ;;  %364 = vmatprep.mubr.bf16.mxu1 %v3389_v0 }
  0x3f   :  { %1714 = vmatprep.subr.bf16.mxu0 %v3137_v7 }
  0x45   :  { %2656 = vmatmul.mubr.msk.bf16.gmra.mrb[12].mxu0 %vm164_vm0, %v3114_v8  ;;  %2664 = vmatmul.mubr.msk.bf16.gmra.mrb[12].mxu1 %vm164_vm0, %v3114_v8 }
  0x46   :  { %261 = vmatprep.mubr.bf16.mxu0 %v3389_v0  ;;  %374 = vmatprep.mubr.bf16.mxu1 %v3389_v0 }
  0x4d   :  { %2657 = vmatmul.mubr.msk.bf16.gmra.mrb[16].mxu0 %vm164_vm0, %v3115_v9  ;;  %2665 = vmatmul.mubr.msk.bf16.gmra.mrb[16].mxu1 %vm164_vm0, %v3115_v9 }
  0x4e   :  { %271 = vmatprep.mubr.bf16.mxu0 %v3389_v0  ;;  %384 = vmatprep.mubr.bf16.mxu1 %v3389_v0 }
  0x55   :  { %2658 = vmatmul.mubr.msk.bf16.gmra.mrb[20].mxu0 %vm164_vm0, %v3116_v10  ;;  %2666 = vmatmul.mubr.msk.bf16.gmra.mrb[20].mxu1 %vm164_vm0, %v3116_v10 }
  0x56   :  { %281 = vmatprep.mubr.bf16.mxu0 %v3389_v0  ;;  %394 = vmatprep.mubr.bf16.mxu1 %v3389_v0 }
  0x5d   :  { %2659 = vmatmul.mubr.msk.bf16.gmra.mrb[24].mxu0 %vm164_vm0, %v3117_v11  ;;  %2667 = vmatmul.mubr.msk.bf16.gmra.mrb[24].mxu1 %vm164_vm0, %v3117_v11  ;;  %v3135_v11 = vld [vmem:[#allocation2 + $0x60] ss:$12 sps:$4 sm:$0xff]  }
  0x5e   :  { %291 = vmatprep.mubr.bf16.mxu0 %v3389_v0  ;;  %404 = vmatprep.mubr.bf16.mxu1 %v3389_v0 }
  0x5f   :  { %1715 = vmatpush1.bf16.msra.mxu0 %v3135_v11 }
  0x65   :  { %2660 = vmatmul.mubr.msk.bf16.gmra.mrb[28].mxu0 %vm164_vm0, %v3118_v12  ;;  %2668 = vmatmul.mubr.msk.bf16.gmra.mrb[28].mxu1 %vm164_vm0, %v3118_v12 }
 0x100   :  { %v223_v13 = vpop.f32.mrb[0].mxu0  ;;  %v336_v14 = vpop.f32.mrb[0].mxu1 }
 0x101   :  { %v225_v15 = vpop.f32.mrb[1].mxu0  ;;  %v338_v16 = vpop.f32.mrb[1].mxu1  ;;  %v3559_v54 = vadd.f32 %v223_v13, %v3538_v41  ;;  %v3568_v60 = vadd.f32 %v336_v14, %v3541_v43 }
 0x102   :  { %v227_v18 = vpop.f32.mrb[2].mxu0  ;;  %v340_v19 = vpop.f32.mrb[2].mxu1  ;;  %v3571_v61 = vadd.f32 %v225_v15, %v3544_v44  ;;  %v3580_v2 = vadd.f32 %v338_v16, %v3547_v45 }
 0x103   :  { %v229_v20 = vpop.f32.mrb[3].mxu0  ;;  %v342_v21 = vpop.f32.mrb[3].mxu1  ;;  %v3550_v46 = vadd.f32 %v227_v18, %v3538_v41  ;;  %v3553_v49 = vadd.f32 %v340_v19, %v3541_v43  ;;  %4629 = vst [vmem:[#allocation19_spill] sm:$0xff] %v3568_v60 }
 0x104   :  { %v3556_v50 = vadd.f32 %v229_v20, %v3544_v44  ;;  %v3562_v55 = vadd.f32 %v342_v21, %v3547_v45  ;;  %4630 = vst [vmem:[#allocation20_spill] sm:$0xff] %v3571_v61  ;;  %4631 = vst [vmem:[#allocation21_spill] sm:$0xff] %v3580_v2 }
 0x105   :  { %4626 = vst [vmem:[#allocation16_spill] sm:$0xff] %v3553_v49  ;;  %v415_v3 = vadd.f32 %v3550_v46, %v3559_v54  ;;  %v457_v5 = vadd.f32 %v3553_v49, %v3568_v60 }
 0x106   :  { %4627 = vst [vmem:[#allocation17_spill] sm:$0xff] %v3556_v50  ;;  %4628 = vst [vmem:[#allocation18_spill] sm:$0xff] %v3562_v55  ;;  %v436_v6 = vadd.f32 %v3556_v50, %v3571_v61  ;;  %v478_v8 = vadd.f32 %v3562_v55, %v3580_v2 }
 0x108   :  { %v233_v25 = vpop.f32.mrb[4].mxu0  ;;  %v346_v26 = vpop.f32.mrb[4].mxu1 }
 0x109   :  { %v235_v27 = vpop.f32.mrb[5].mxu0  ;;  %v348_v28 = vpop.f32.mrb[5].mxu1  ;;  %v3565_v56 = vadd.f32 %v233_v25, %v3538_v41  ;;  %v3574_v62 = vadd.f32 %v346_v26, %v3541_v43  ;;  %v3141_v26 = vld [vmem:[#allocation2 + $0x7c] ss:$12 sps:$4 sm:$0xff]  }
 0x10a   :  { %v237_v31 = vpop.f32.mrb[6].mxu0  ;;  %v350_v32 = vpop.f32.mrb[6].mxu1  ;;  %v3577_v63 = vadd.f32 %v235_v27, %v3544_v44  ;;  %v3585_v4 = vadd.f32 %v348_v28, %v3547_v45  ;;  %1716 = vmatprep.subr.bf16.mxu0 %v3141_v26 }
 0x10b   :  { %v239_v37 = vpop.f32.mrb[7].mxu0  ;;  %v352_v38 = vpop.f32.mrb[7].mxu1  ;;  %v416_v9 = vadd.f32 %v415_v3, %v3565_v56  ;;  %v3595_v10 = vadd.f32 %v237_v31, %v3538_v41  ;;  %v458_v12 = vadd.f32 %v457_v5, %v3574_v62  ;;  %v3600_v14 = vadd.f32 %v350_v32, %v3541_v43  ;;  %v3139_v32 = vld [vmem:[#allocation2 + $0x78] ss:$12 sps:$4 sm:$0xff]  }
 0x10c   :  { %4632 = vst [vmem:[#allocation22_spill] sm:$0xff] %v3585_v4  ;;  %v437_v13 = vadd.f32 %v436_v6, %v3577_v63  ;;  %v3603_v15 = vadd.f32 %v239_v37, %v3544_v44  ;;  %v479_v16 = vadd.f32 %v478_v8, %v3585_v4  ;;  %v3607_v17 = vadd.f32 %v352_v38, %v3547_v45  ;;  %v3143_v6 = vld [vmem:[#allocation2 + $0x90] ss:$12 sps:$4 sm:$0xff]  }
 0x10d   :  { %4633 = vst [vmem:[#allocation23_spill] sm:$0xff] %v3600_v14  ;;  %v417_v27 = vadd.f32 %v416_v9, %v3595_v10  ;;  %v459_v33 = vadd.f32 %v458_v12, %v3600_v14  ;;  %1717 = vmatpush1.bf16.msra.mxu0 %v3139_v32  ;;  %v3147_v32 = vld [vmem:[#allocation2 + $0xa8] ss:$12 sps:$4 sm:$0xff]  }
 0x10e   :  { %4634 = vst [vmem:[#allocation24_spill] sm:$0xff] %v3607_v17  ;;  %v438_v34 = vadd.f32 %v437_v13, %v3603_v15  ;;  %v480_v40 = vadd.f32 %v479_v16, %v3607_v17  ;;  %1718 = vmatprep.subr.bf16.mxu0 %v3145_v59 }
 0x110   :  { %v243_v47 = vpop.f32.mrb[8].mxu0  ;;  %v356_v48 = vpop.f32.mrb[8].mxu1 }
 0x111   :  { %v245_v51 = vpop.f32.mrb[9].mxu0  ;;  %v358_v52 = vpop.f32.mrb[9].mxu1  ;;  %v3610_v18 = vadd.f32 %v243_v47, %v3538_v41  ;;  %v3613_v21 = vadd.f32 %v356_v48, %v3541_v43  ;;  %1719 = vmatpush1.bf16.msra.mxu0 %v3143_v6 }
 0x112   :  { %v247_v57 = vpop.f32.mrb[10].mxu0  ;;  %v360_v58 = vpop.f32.mrb[10].mxu1  ;;  %v3616_v22 = vadd.f32 %v245_v51, %v3544_v44  ;;  %v3620_v28 = vadd.f32 %v358_v52, %v3547_v45 }
 0x113   :  { %v249_v0 = vpop.f32.mrb[11].mxu0  ;;  %v362_v1 = vpop.f32.mrb[11].mxu1  ;;  %4635 = vst [vmem:[#allocation25_spill] sm:$0xff] %v3613_v21  ;;  %v418_v42 = vadd.f32 %v417_v27, %v3610_v18  ;;  %v3627_v47 = vadd.f32 %v247_v57, %v3538_v41  ;;  %v460_v48 = vadd.f32 %v459_v33, %v3613_v21  ;;  %v3632_v52 = vadd.f32 %v360_v58, %v3541_v43 }
 0x114   :  { %4636 = vst [vmem:[#allocation26_spill] sm:$0xff] %v3620_v28  ;;  %v439_v51 = vadd.f32 %v438_v34, %v3616_v22  ;;  %v3635_v53 = vadd.f32 %v249_v0, %v3544_v44  ;;  %v481_v3 = vadd.f32 %v480_v40, %v3620_v28  ;;  %v3639_v5 = vadd.f32 %v362_v1, %v3547_v45  ;;  %v3142_v28 = vld [vmem:[#allocation2 + $0x38] ss:$12 sps:$4 sm:$0xff]  }
 0x115   :  { %4637 = vst [vmem:[#allocation27_spill] sm:$0xff] %v3632_v52  ;;  %v419_v58 = vadd.f32 %v418_v42, %v3627_v47  ;;  %v461_v1 = vadd.f32 %v460_v48, %v3632_v52 }
 0x116   :  { %4638 = vst [vmem:[#allocation28_spill] sm:$0xff] %v3635_v53  ;;  %4639 = vst [vmem:[#allocation29_spill] sm:$0xff] %v3639_v5  ;;  %v440_v12 = vadd.f32 %v439_v51, %v3635_v53 }
 0x118   :  { %v253_v19 = vpop.f32.mrb[12].mxu0  ;;  %v366_v20 = vpop.f32.mrb[12].mxu1 }
 0x119   :  { %v255_v24 = vpop.f32.mrb[13].mxu0  ;;  %v368_v25 = vpop.f32.mrb[13].mxu1  ;;  %v3642_v57 = vadd.f32 %v253_v19, %v3538_v41  ;;  %v3645_v7 = vadd.f32 %v366_v20, %v3541_v43  ;;  %v3149_v19 = vld [vmem:[#allocation2 + $0xac] ss:$12 sps:$4 sm:$0xff]   ;;  %v482_v20 = vadd.f32 %v481_v3, %v3639_v5 }
 0x11a   :  { %v257_v29 = vpop.f32.mrb[14].mxu0  ;;  %v370_v31 = vpop.f32.mrb[14].mxu1  ;;  %v3648_v8 = vadd.f32 %v255_v24, %v3544_v44  ;;  %v3652_v0 = vadd.f32 %v368_v25, %v3547_v45  ;;  %1720 = vmatprep.subr.bf16.mxu0 %v3149_v19  ;;  %v3126_v19 = vld [vmem:[#allocation2 + $0x8] ss:$12 sps:$4 sm:$0xff]  }
 0x11b   :  { %v259_v37 = vpop.f32.mrb[15].mxu0  ;;  %v372_v38 = vpop.f32.mrb[15].mxu1  ;;  %v420_v24 = vadd.f32 %v419_v58, %v3642_v57  ;;  %v3659_v26 = vadd.f32 %v257_v29, %v3538_v41  ;;  %v462_v33 = vadd.f32 %v461_v1, %v3645_v7  ;;  %v3664_v40 = vadd.f32 %v370_v31, %v3541_v43  ;;  %1721 = vmatpush1.bf16.msra.mxu0 %v3147_v32  ;;  %v3153_v58 = vld [vmem:[#allocation2 + $0xc4] ss:$12 sps:$4 sm:$0xff]  }
 0x11c   :  { %4640 = vst [vmem:[#allocation30_spill] sm:$0xff] %v3648_v8  ;;  %4641 = vst [vmem:[#allocation31_spill] sm:$0xff] %v3652_v0  ;;  %v441_v34 = vadd.f32 %v440_v12, %v3648_v8  ;;  %v3667_v42 = vadd.f32 %v259_v37, %v3544_v44  ;;  %v483_v59 = vadd.f32 %v482_v20, %v3652_v0  ;;  %v3122_v37 = vld [vmem:[#allocation2 + $0xc8] ss:$12 sps:$4 sm:$0xff]   ;;  %1722 = vmatprep.subr.bf16.mxu0 %v3153_v58  ;;  %v3130_v58 = vld [vmem:[#allocation2 + $0xe0] ss:$12 sps:$4 sm:$0xff]  }
 0x11d   :  { %v3671_v29 = vadd.f32 %v372_v38, %v3547_v45  ;;  %v421_v1 = vadd.f32 %v420_v24, %v3659_v26  ;;  %v3151_v38 = vld [vmem:[#allocation2 + $0xc0] ss:$12 sps:$4 sm:$0xff]   ;;  %v463_v20 = vadd.f32 %v462_v33, %v3664_v40  ;;  %2790 = vmatprep.subr.bf16.mxu1 %v3122_v37 }
 0x11e   :  { %4642 = vst [vmem:[#allocation32_spill] sm:$0xff] %v3667_v42  ;;  %2791 = vmatpush3.bf16.msra.mxu1 %v3126_v19  ;;  %v3161_v0 = vld [vmem:[#allocation2 + $0xf4] ss:$12 sps:$4 sm:$0xff]  }
 0x11f   :  { %4643 = vst [vmem:[#allocation33_spill] sm:$0xff] %v3671_v29  ;;  %1723 = vmatpush1.bf16.msra.mxu0 %v3151_v38  ;;  %2792 = vmatprep.subr.bf16.mxu1 %v3130_v58 }
 0x120   :  { %v263_v9 = vpop.f32.mrb[16].mxu0  ;;  %v376_v11 = vpop.f32.mrb[16].mxu1 }
 0x121   :  { %v265_v13 = vpop.f32.mrb[17].mxu0  ;;  %v378_v16 = vpop.f32.mrb[17].mxu1  ;;  %v3674_v3 = vadd.f32 %v263_v9, %v3538_v41  ;;  %v3677_v6 = vadd.f32 %v376_v11, %v3541_v43  ;;  %v442_v9 = vadd.f32 %v441_v34, %v3667_v42  ;;  %v484_v11 = vadd.f32 %v483_v59, %v3671_v29  ;;  %v3157_v59 = vld [vmem:[#allocation2 + $0xdc] ss:$12 sps:$4 sm:$0xff]  }
 0x122   :  { %v267_v27 = vpop.f32.mrb[18].mxu0  ;;  %v380_v25 = vpop.f32.mrb[18].mxu1  ;;  %v3680_v31 = vadd.f32 %v265_v13, %v3544_v44  ;;  %v3684_v12 = vadd.f32 %v378_v16, %v3547_v45  ;;  %1724 = vmatprep.subr.bf16.mxu0 %v3157_v59 }
 0x123   :  { %v269_v48 = vpop.f32.mrb[19].mxu0  ;;  %v382_v51 = vpop.f32.mrb[19].mxu1  ;;  %v422_v13 = vadd.f32 %v421_v1, %v3674_v3  ;;  %v3691_v32 = vadd.f32 %v267_v27, %v3538_v41  ;;  %v464_v16 = vadd.f32 %v463_v20, %v3677_v6  ;;  %v3696_v33 = vadd.f32 %v380_v25, %v3541_v43  ;;  %v3155_v25 = vld [vmem:[#allocation2 + $0xd8] ss:$12 sps:$4 sm:$0xff]  }
 0x124   :  { %4644 = vst [vmem:[#allocation34_spill] sm:$0xff] %v3680_v31  ;;  %4645 = vst [vmem:[#allocation35_spill] sm:$0xff] %v3684_v12  ;;  %v443_v39 = vadd.f32 %v442_v9, %v3680_v31  ;;  %v485_v1 = vadd.f32 %v484_v11, %v3684_v12  ;;  %v3700_v27 = vadd.f32 %v269_v48, %v3544_v44  ;;  %v3134_v9 = vld [vmem:[#allocation2 + $0x20] ss:$12 sps:$4 sm:$0xff]   ;;  %v3138_v12 = vld [vmem:[#allocation2 + $0xf8] ss:$12 sps:$4 sm:$0xff]   ;;  %1725 = vmatpush1.bf16.msra.mxu0 %v3155_v25 }
 0x125   :  { %v3703_v35 = vadd.f32 %v382_v51, %v3547_v45  ;;  %v423_v11 = vadd.f32 %v422_v13, %v3691_v32  ;;  %2793 = vmatpush3.bf16.msra.mxu1 %v3134_v9  ;;  %v3159_v13 = vld [vmem:[#allocation2 + $0xf0] ss:$12 sps:$4 sm:$0xff]   ;;  %1726 = vmatprep.subr.bf16.mxu0 %v3161_v0 }
 0x126   :  { %4646 = vst [vmem:[#allocation36_spill] sm:$0xff] %v3700_v27  ;;  %2794 = vmatprep.subr.bf16.mxu1 %v3138_v12 }
 0x127   :  { %4647 = vst [vmem:[#allocation37_spill] sm:$0xff] %v3703_v35  ;;  %v486_v5 = vadd.f32 %v485_v1, %v3703_v35  ;;  %v3150_v35 = vld [vmem:[#allocation2 + $0x50] ss:$12 sps:$4 sm:$0xff]  }
 0x128   :  { %v273_v23 = vpop.f32.mrb[20].mxu0  ;;  %v386_v24 = vpop.f32.mrb[20].mxu1  ;;  %1727 = vmatpush1.bf16.msra.mxu0 %v3159_v13 }
 0x129   :  { %v275_v34 = vpop.f32.mrb[21].mxu0  ;;  %v388_v37 = vpop.f32.mrb[21].mxu1  ;;  %v3706_v19 = vadd.f32 %v273_v23, %v3538_v41  ;;  %v3709_v36 = vadd.f32 %v386_v24, %v3541_v43  ;;  %v465_v23 = vadd.f32 %v464_v16, %v3696_v33  ;;  %v444_v24 = vadd.f32 %v443_v39, %v3700_v27  ;;  %2795 = vmatpush3.bf16.msra.mxu1 %v3142_v28  ;;  %v3163_v28 = vld [vmem:[#allocation2 + $0x108] ss:$12 sps:$4 sm:$0xff]  }
 0x12a   :  { %v277_v38 = vpop.f32.mrb[22].mxu0  ;;  %v390_v20 = vpop.f32.mrb[22].mxu1  ;;  %v3713_v48 = vadd.f32 %v275_v34, %v3544_v44  ;;  %v3716_v51 = vadd.f32 %v388_v37, %v3547_v45 }
 0x12b   :  { %v279_v30 = vpop.f32.mrb[23].mxu0  ;;  %v392_v29 = vpop.f32.mrb[23].mxu1  ;;  %v424_v58 = vadd.f32 %v423_v11, %v3706_v19  ;;  %v466_v34 = vadd.f32 %v465_v23, %v3709_v36  ;;  %v3724_v37 = vadd.f32 %v277_v38, %v3538_v41  ;;  %v3727_v9 = vadd.f32 %v390_v20, %v3541_v43  ;;  %v3146_v23 = vld [vmem:[#allocation2 + $0x110] ss:$12 sps:$4 sm:$0xff]  }
 0x12c   :  { %4648 = vst [vmem:[#allocation38_spill] sm:$0xff] %v3713_v48  ;;  %4649 = vst [vmem:[#allocation39_spill] sm:$0xff] %v3716_v51  ;;  %v445_v16 = vadd.f32 %v444_v24, %v3713_v48  ;;  %v487_v39 = vadd.f32 %v486_v5, %v3716_v51  ;;  %v3732_v59 = vadd.f32 %v279_v30, %v3544_v44  ;;  %v3165_v24 = vld [vmem:[#allocation2 + $0x10c] ss:$12 sps:$4 sm:$0xff]   ;;  %2796 = vmatprep.subr.bf16.mxu1 %v3146_v23 }
 0x12d   :  { %v3735_v1 = vadd.f32 %v392_v29, %v3547_v45  ;;  %2797 = vmatpush3.bf16.msra.mxu1 %v3150_v35  ;;  %1728 = vmatprep.subr.bf16.mxu0 %v3165_v24 }
 0x12e   :  { %4650 = vst [vmem:[#allocation40_spill] sm:$0xff] %v3732_v59  ;;  %v446_v27 = vadd.f32 %v445_v16, %v3732_v59  ;;  %1729 = vmatpush1.bf16.msra.mxu0 %v3163_v28  ;;  %v3173_v28 = vld [vmem:[#allocation2 + $0x13c] ss:$12 sps:$4 sm:$0xff]  }
 0x12f   :  { %4651 = vst [vmem:[#allocation41_spill] sm:$0xff] %v3735_v1 }
 0x130   :  { %v283_v25 = vpop.f32.mrb[24].mxu0  ;;  %v396_v11 = vpop.f32.mrb[24].mxu1 }
 0x131   :  { %v3738_v38 = vadd.f32 %v283_v25, %v3538_v41  ;;  %v3741_v20 = vadd.f32 %v396_v11, %v3541_v43  ;;  %v285_v0 = vpop.f32.mrb[25].mxu0  ;;  %v398_v12 = vpop.f32.mrb[25].mxu1  ;;  %v425_v25 = vadd.f32 %v424_v58, %v3724_v37  ;;  %v467_v11 = vadd.f32 %v466_v34, %v3727_v9  ;;  %v3154_v58 = vld [vmem:[#allocation2 + $0x128] ss:$12 sps:$4 sm:$0xff]   ;;  %v3169_v34 = vld [vmem:[#allocation2 + $0x124] ss:$12 sps:$4 sm:$0xff]  }
 0x132   :  { %v3744_v5 = vadd.f32 %v285_v0, %v3544_v44  ;;  %v3747_v30 = vadd.f32 %v398_v12, %v3547_v45  ;;  %v287_v29 = vpop.f32.mrb[26].mxu0  ;;  %v400_v51 = vpop.f32.mrb[26].mxu1  ;;  %v488_v0 = vadd.f32 %v487_v39, %v3735_v1  ;;  %2798 = vmatprep.subr.bf16.mxu1 %v3154_v58  ;;  %1730 = vmatprep.subr.bf16.mxu0 %v3169_v34  ;;  %v3162_v1 = vld [vmem:[#allocation2 + $0x140] ss:$12 sps:$4 sm:$0xff]  }
 0x133   :  { %4652 = vst [vmem:[#allocation42_spill] sm:$0xff] %v3738_v38  ;;  %v289_v48 = vpop.f32.mrb[27].mxu0  ;;  %v402_v17 = vpop.f32.mrb[27].mxu1  ;;  %v426_v12 = vadd.f32 %v425_v25, %v3738_v38  ;;  %v468_v4 = vadd.f32 %v467_v11, %v3741_v20  ;;  %v3756_v31 = vadd.f32 %v287_v29, %v3538_v41  ;;  %v3759_v13 = vadd.f32 %v400_v51, %v3541_v43  ;;  %v3158_v25 = vld [vmem:[#allocation2 + $0x68] ss:$12 sps:$4 sm:$0xff]  }
 0x134   :  { %4653 = vst [vmem:[#allocation43_spill] sm:$0xff] %v3744_v5  ;;  %4654 = vst [vmem:[#allocation44_spill] sm:$0xff] %v3747_v30  ;;  %v447_v23 = vadd.f32 %v446_v27, %v3744_v5  ;;  %v489_v16 = vadd.f32 %v488_v0, %v3747_v30  ;;  %v3764_v39 = vadd.f32 %v289_v48, %v3544_v44  ;;  %v3167_v29 = vld [vmem:[#allocation2 + $0x120] ss:$12 sps:$4 sm:$0xff]   ;;  %2799 = vmatpush3.bf16.msra.mxu1 %v3158_v25 }
 0x135   :  { %4655 = vst [vmem:[#allocation45_spill] sm:$0xff] %v3756_v31  ;;  %v3767_v35 = vadd.f32 %v402_v17, %v3547_v45  ;;  %v427_v24 = vadd.f32 %v426_v12, %v3756_v31  ;;  %v469_v27 = vadd.f32 %v468_v4, %v3759_v13  ;;  %v3166_v5 = vld [vmem:[#allocation2 + $0x80] ss:$12 sps:$4 sm:$0xff]   ;;  %1731 = vmatpush1.bf16.msra.mxu0 %v3167_v29 }
 0x136   :  { %4656 = vst [vmem:[#allocation46_spill] sm:$0xff] %v3764_v39  ;;  %v448_v58 = vadd.f32 %v447_v23, %v3764_v39  ;;  %2800 = vmatprep.subr.bf16.mxu1 %v3162_v1  ;;  %1732 = vmatprep.subr.bf16.mxu0 %v3173_v28  ;;  %v3175_v1 = vld [vmem:[#allocation2 + $0x150] ss:$12 sps:$4 sm:$0xff]   ;;  %v3179_v28 = vld [vmem:[#allocation2 + $0x168] ss:$12 sps:$4 sm:$0xff]  }
 0x137   :  { %4657 = vst [vmem:[#allocation47_spill] sm:$0xff] %v3767_v35  ;;  %v490_v34 = vadd.f32 %v489_v16, %v3767_v35 }
 0x138   :  { %v293_v51 = vpop.f32.mrb[28].mxu0  ;;  %v406_v11 = vpop.f32.mrb[28].mxu1  ;;  %2801 = vmatpush3.bf16.msra.mxu1 %v3166_v5 }
 0x139   :  { %v3772_v0 = vadd.f32 %v293_v51, %v3538_v41  ;;  %v3775_v48 = vadd.f32 %v406_v11, %v3541_v43  ;;  %v295_v17 = vpop.f32.mrb[29].mxu0  ;;  %v408_v30 = vpop.f32.mrb[29].mxu1  ;;  %v3171_v11 = vld [vmem:[#allocation2 + $0x138] ss:$12 sps:$4 sm:$0xff]  }
 0x13a   :  { %v3780_v25 = vadd.f32 %v295_v17, %v3544_v44  ;;  %v3783_v12 = vadd.f32 %v408_v30, %v3547_v45  ;;  %v297_v4 = vpop.f32.mrb[30].mxu0  ;;  %v410_v51 = vpop.f32.mrb[30].mxu1  ;;  %1733 = vmatpush1.bf16.msra.mxu0 %v3171_v11 }
 0x13b   :  { %4658 = vst [vmem:[#allocation48_spill] sm:$0xff] %v3772_v0  ;;  %v428_v59 = vadd.f32 %v427_v24, %v3772_v0  ;;  %v470_v42 = vadd.f32 %v469_v27, %v3775_v48  ;;  %v3788_v55 = vadd.f32 %v297_v4, %v3538_v41  ;;  %v3791_v23 = vadd.f32 %v410_v51, %v3541_v43  ;;  %v299_v16 = vpop.f32.mrb[31].mxu0  ;;  %v412_v17 = vpop.f32.mrb[31].mxu1  ;;  %v3170_v43 = vld [vmem:[#allocation2 + $0x158] ss:$12 sps:$4 sm:$0xff]  }
 0x13c   :  { %4659 = vst [vmem:[#allocation49_spill] sm:$0xff] %v3780_v25  ;;  %4660 = vst [vmem:[#allocation50_spill] sm:$0xff] %v3783_v12  ;;  %v449_v30 = vadd.f32 %v448_v58, %v3780_v25  ;;  %v491_v35 = vadd.f32 %v490_v34, %v3783_v12  ;;  %v3796_v29 = vadd.f32 %v299_v16, %v3544_v44  ;;  %v3174_v4 = vld [vmem:[#allocation2 + $0x98] ss:$12 sps:$4 sm:$0xff]   ;;  %v3177_v51 = vld [vmem:[#allocation2 + $0x154] ss:$12 sps:$4 sm:$0xff]   ;;  %2802 = vmatprep.subr.bf16.mxu1 %v3170_v43 }
 0x13d   :  { %4661 = vst [vmem:[#allocation51_spill] sm:$0xff] %v3788_v55  ;;  %4662 = vst [vmem:[#allocation52_spill] sm:$0xff] %v3791_v23  ;;  %v3799_v24 = vadd.f32 %v412_v17, %v3547_v45  ;;  %v429_v41 = vadd.f32 %v428_v59, %v3788_v55  ;;  %v471_v27 = vadd.f32 %v470_v42, %v3791_v23  ;;  %v3178_v58 = vld [vmem:[#allocation2 + $0x170] ss:$12 sps:$4 sm:$0xff]   ;;  %v3181_v44 = vld [vmem:[#allocation2 + $0x16c] ss:$12 sps:$4 sm:$0xff]   ;;  %2803 = vmatpush3.bf16.msra.mxu1 %v3174_v4 }
 0x13e   :  { %4663 = vst [vmem:[#allocation53_spill] sm:$0xff] %v3796_v29  ;;  %v450_v16 = vadd.f32 %v449_v30, %v3796_v29  ;;  %1734 = vmatprep.subr.bf16.mxu0 %v3177_v51  ;;  %v3182_v59 = vld [vmem:[#allocation2 + $0xb0] ss:$12 sps:$4 sm:$0xff]   ;;  %2804 = vmatprep.subr.bf16.mxu1 %v3178_v58  ;;  %v3186_v51 = vld [vmem:[#allocation2 + $0x248] ss:$12 sps:$4 sm:$0xff]  }
 0x13f   :  { %v430_v25 = vrot.slane %v429_v41, 4  ;;  %v472_v34 = vrot.slane %v471_v27, 4  ;;  %v492_v45 = vadd.f32 %v491_v35, %v3799_v24  ;;  %1735 = vmatpush1.bf16.msra.mxu0 %v3175_v1  ;;  %v3185_v23 = vld [vmem:[#allocation2 + $0x184] ss:$12 sps:$4 sm:$0xff]  }
 0x140   :  { %1736 = vmatprep.subr.bf16.mxu0 %v3181_v44  ;;  %v451_v12 = vrot.slane %v450_v16, 4 }
 0x141   :  { %v431_v5 = vadd.f32 %v430_v25, %v429_v41  ;;  %v473_v42 = vadd.f32 %v472_v34, %v471_v27  ;;  %v493_v39 = vrot.slane %v492_v45, 4  ;;  %2805 = vmatpush3.bf16.msra.mxu1 %v3182_v59 }
 0x142   :  { %v452_v35 = vadd.f32 %v451_v12, %v450_v16  ;;  %2854 = vmatprep.subr.bf16.mxu1 %v3186_v51 }
 0x143   :  { %v432_v11 = vrot.slane %v431_v5, 2  ;;  %v474_v17 = vrot.slane %v473_v42, 2  ;;  %1737 = vmatpush1.bf16.msra.mxu0 %v3179_v28  ;;  %v494_v4 = vadd.f32 %v493_v39, %v492_v45 }
 0x144   :  { %1819 = vmatprep.subr.bf16.mxu0 %v3185_v23  ;;  %v453_v1 = vrot.slane %v452_v35, 2 }
 0x145   :  { %v433_v43 = vadd.f32 %v432_v11, %v431_v5  ;;  %v475_v2 = vadd.f32 %v474_v17, %v473_v42  ;;  %v495_v58 = vrot.slane %v494_v4, 2 }
 0x146   :  { %v454_v5 = vadd.f32 %v453_v1, %v452_v35 }
 0x147   :  { %v434_v30 = vrot.slane %v433_v43, 1  ;;  %v476_v41 = vrot.slane %v475_v2, 1  ;;  %v496_v42 = vadd.f32 %v495_v58, %v494_v4 }
 0x148   :  { %v455_v28 = vrot.slane %v454_v5, 1 }
 0x149   :  { %v435_v25 = vadd.f32 %v434_v30, %v433_v43  ;;  %v477_v59 = vadd.f32 %v476_v41, %v475_v2  ;;  %v497_v11 = vrot.slane %v496_v42, 1 }
 0x14a   :  { %v456_v41 = vadd.f32 %v455_v28, %v454_v5 }
 0x14b   :  { %v3805_v27 = vmul.f32 0.0078125, %v435_v25  ;;  %v3813_v16 = vmul.f32 0.0078125, %v477_v59  ;;  %v498_v1 = vadd.f32 %v497_v11, %v496_v42 }
 0x14c   :  { %v3835_v42 = vmul.f32 0.0078125, %v456_v41 }
 0x14d   :  { %v503_v34 = vsub.f32 %v3559_v54, %v3805_v27  ;;  %v507_v44 = vsub.f32 %v3550_v46, %v3805_v27  ;;  %v511_v39 = vsub.f32 %v3565_v56, %v3805_v27  ;;  %v515_v45 = vsub.f32 %v3595_v10, %v3805_v27 }
 0x14e   :  { %v519_v17 = vsub.f32 %v3610_v18, %v3805_v27  ;;  %v505_v2 = vsub.f32 %v3568_v60, %v3813_v16  ;;  %v509_v35 = vsub.f32 %v3553_v49, %v3813_v16  ;;  %v523_v4 = vsub.f32 %v3627_v47, %v3805_v27 }
 0x14f   :  { %v567_v12 = vmul.f32 %v503_v34, %v503_v34  ;;  %v571_v23 = vmul.f32 %v507_v44, %v507_v44  ;;  %v575_v43 = vmul.f32 %v511_v39, %v511_v39  ;;  %v579_v51 = vmul.f32 %v515_v45, %v515_v45 }
 0x150   :  { %v527_v58 = vsub.f32 %v3642_v57, %v3805_v27  ;;  %v583_v34 = vmul.f32 %v519_v17, %v519_v17  ;;  %v513_v59 = vsub.f32 %v3574_v62, %v3813_v16  ;;  %v569_v39 = vmul.f32 %v505_v2, %v505_v2 }
 0x151   :  { %v631_v30 = vadd.f32 %v571_v23, %v567_v12  ;;  %v573_v12 = vmul.f32 %v509_v35, %v509_v35  ;;  %v531_v23 = vsub.f32 %v3659_v26, %v3805_v27  ;;  %v587_v49 = vmul.f32 %v523_v4, %v523_v4 }
 0x152   :  { %v535_v45 = vsub.f32 %v3674_v3, %v3805_v27  ;;  %v517_v5 = vsub.f32 %v3600_v14, %v3813_v16  ;;  %v3837_v28 = vmul.f32 0.0078125, %v498_v1  ;;  %v539_v11 = vsub.f32 %v3691_v32, %v3805_v27 }
 0x153   :  { %v632_v25 = vadd.f32 %v631_v30, %v575_v43  ;;  %v543_v17 = vsub.f32 %v3706_v19, %v3805_v27  ;;  %v591_v43 = vmul.f32 %v527_v58, %v527_v58  ;;  %v547_v2 = vsub.f32 %v3724_v37, %v3805_v27 }
 0x154   :  { %v521_v35 = vsub.f32 %v3613_v21, %v3813_v16  ;;  %v577_v4 = vmul.f32 %v513_v59, %v513_v59  ;;  %v555_v41 = vsub.f32 %v3756_v31, %v3805_v27  ;;  %v595_v1 = vmul.f32 %v531_v23, %v531_v23 }
 0x155   :  { %v633_v44 = vadd.f32 %v632_v25, %v579_v51  ;;  %v673_v51 = vadd.f32 %v573_v12, %v569_v39  ;;  %v551_v25 = vsub.f32 %v3738_v38, %v3805_v27  ;;  %v559_v58 = vsub.f32 %v3772_v0, %v3805_v27 }
 0x156   :  { %v599_v14 = vmul.f32 %v535_v45, %v535_v45  ;;  %v504_v59 = vsub.f32 %v3571_v61, %v3835_v42  ;;  %v508_v39 = vsub.f32 %v3556_v50, %v3835_v42  ;;  %v563_v12 = vsub.f32 %v3788_v55, %v3805_v27 }
 0x157   :  { %v634_v60 = vadd.f32 %v633_v44, %v583_v34  ;;  %v674_v44 = vadd.f32 %v673_v51, %v577_v4  ;;  %v529_v23 = vsub.f32 %v3645_v7, %v3813_v16  ;;  %v603_v0 = vmul.f32 %v539_v11, %v539_v11 }
 0x158   :  { %v607_v31 = vmul.f32 %v543_v17, %v543_v17  ;;  %v615_v45 = vmul.f32 %v551_v25, %v551_v25  ;;  %v533_v51 = vsub.f32 %v3664_v40, %v3813_v16  ;;  %v512_v50 = vsub.f32 %v3577_v63, %v3835_v42 }
 0x159   :  { %v635_v30 = vadd.f32 %v634_v60, %v587_v49  ;;  %v525_v49 = vsub.f32 %v3632_v52, %v3813_v16  ;;  %v581_v60 = vmul.f32 %v517_v5, %v517_v5  ;;  %v611_v5 = vmul.f32 %v547_v2, %v547_v2 }
 0x15a   :  { %v568_v55 = vmul.f32 %v504_v59, %v504_v59  ;;  %v572_v61 = vmul.f32 %v508_v39, %v508_v39  ;;  %v619_v52 = vmul.f32 %v555_v41, %v555_v41  ;;  %v593_v11 = vmul.f32 %v529_v23, %v529_v23 }
 0x15b   :  { %v636_v34 = vadd.f32 %v635_v30, %v591_v43  ;;  %v585_v43 = vmul.f32 %v521_v35, %v521_v35  ;;  %v675_v30 = vadd.f32 %v674_v44, %v581_v60  ;;  %v537_v35 = vsub.f32 %v3677_v6, %v3813_v16 }
 0x15c   :  { %v623_v2 = vmul.f32 %v559_v58, %v559_v58  ;;  %v516_v25 = vsub.f32 %v3603_v15, %v3835_v42  ;;  %v597_v60 = vmul.f32 %v533_v51, %v533_v51  ;;  %v520_v59 = vsub.f32 %v3616_v22, %v3835_v42 }
 0x15d   :  { %v637_v21 = vadd.f32 %v636_v34, %v595_v1  ;;  %v589_v1 = vmul.f32 %v525_v49, %v525_v49  ;;  %v676_v34 = vadd.f32 %v675_v30, %v585_v43  ;;  %v545_v49 = vsub.f32 %v3709_v36, %v3813_v16 }
 0x15e   :  { %v576_v39 = vmul.f32 %v512_v50, %v512_v50  ;;  %v652_v23 = vadd.f32 %v572_v61, %v568_v55  ;;  %v601_v58 = vmul.f32 %v537_v35, %v537_v35  ;;  %v524_v30 = vsub.f32 %v3635_v53, %v3835_v42 }
 0x15f   :  { %v638_v4 = vadd.f32 %v637_v21, %v599_v14  ;;  %v677_v17 = vadd.f32 %v676_v34, %v589_v1  ;;  %v627_v14 = vmul.f32 %v563_v12, %v563_v12  ;;  %v561_v50 = vsub.f32 %v3775_v48, %v3813_v16 }
 0x160   :  { %v653_v51 = vadd.f32 %v652_v23, %v576_v39  ;;  %v528_v34 = vsub.f32 %v3648_v8, %v3835_v42  ;;  %v584_v35 = vmul.f32 %v520_v59, %v520_v59  ;;  %v4666_v39 = vld [vmem:[#allocation32_spill] sm:$0xff] }
 0x161   :  { %v639_v38 = vadd.f32 %v638_v4, %v603_v0  ;;  %v541_v0 = vsub.f32 %v3696_v33, %v3813_v16  ;;  %v678_v44 = vadd.f32 %v677_v17, %v593_v11  ;;  %v580_v4 = vmul.f32 %v516_v25, %v516_v25 }
 0x162   :  { %v532_v23 = vsub.f32 %v4666_v39, %v3835_v42 }
 0x163   :  { %v640_v21 = vadd.f32 %v639_v38, %v607_v31  ;;  %v549_v31 = vsub.f32 %v3727_v9, %v3813_v16  ;;  %v553_v38 = vsub.f32 %v3741_v20, %v3813_v16  ;;  %v679_v12 = vadd.f32 %v678_v44, %v597_v60  ;;  %v4665_v60 = vld [vmem:[#allocation18_spill] sm:$0xff] }
 0x164   :  { %v605_v55 = vmul.f32 %v541_v0, %v541_v0  ;;  %v654_v11 = vadd.f32 %v653_v51, %v580_v4  ;;  %v510_v44 = vsub.f32 %v4665_v60, %v3837_v28  ;;  %v588_v0 = vmul.f32 %v524_v30, %v524_v30  ;;  %v4668_v51 = vld [vmem:[#allocation34_spill] sm:$0xff] }
 0x165   :  { %v641_v41 = vadd.f32 %v640_v21, %v611_v5  ;;  %v557_v5 = vsub.f32 %v3759_v13, %v3813_v16  ;;  %v680_v61 = vadd.f32 %v679_v12, %v601_v58  ;;  %v4664_v21 = vld [vmem:[#allocation21_spill] sm:$0xff]  ;;  %v617_v59 = vmul.f32 %v553_v38, %v553_v38 }
 0x166   :  { %v506_v25 = vsub.f32 %v4664_v21, %v3837_v28  ;;  %v655_v58 = vadd.f32 %v654_v11, %v584_v35  ;;  %v574_v39 = vmul.f32 %v510_v44, %v510_v44  ;;  %v4670_v35 = vld [vmem:[#allocation36_spill] sm:$0xff]  ;;  %v596_v53 = vmul.f32 %v532_v23, %v532_v23  ;;  %v4673_v44 = vld [vmem:[#allocation26_spill] sm:$0xff] }
 0x167   :  { %v642_v43 = vadd.f32 %v641_v41, %v615_v45  ;;  %v609_v45 = vmul.f32 %v545_v49, %v545_v49  ;;  %v681_v17 = vadd.f32 %v680_v61, %v605_v55  ;;  %v536_v55 = vsub.f32 %v4668_v51, %v3835_v42 }
 0x168   :  { %v592_v61 = vmul.f32 %v528_v34, %v528_v34  ;;  %v656_v21 = vadd.f32 %v655_v58, %v588_v0  ;;  %v570_v60 = vmul.f32 %v506_v25, %v506_v25  ;;  %v540_v11 = vsub.f32 %v4670_v35, %v3835_v42  ;;  %v4672_v0 = vld [vmem:[#allocation38_spill] sm:$0xff] }
 0x169   :  { %v643_v1 = vadd.f32 %v642_v43, %v619_v52  ;;  %v4667_v52 = vld [vmem:[#allocation52_spill] sm:$0xff]  ;;  %v613_v43 = vmul.f32 %v549_v31, %v549_v31  ;;  %v682_v4 = vadd.f32 %v681_v17, %v609_v45  ;;  %v621_v38 = vmul.f32 %v557_v5, %v557_v5 }
 0x16a   :  { %v565_v12 = vsub.f32 %v4667_v52, %v3813_v16  ;;  %v657_v31 = vadd.f32 %v656_v21, %v592_v61  ;;  %v625_v45 = vmul.f32 %v561_v50, %v561_v50  ;;  %v4671_v17 = vld [vmem:[#allocation24_spill] sm:$0xff]  ;;  %v544_v58 = vsub.f32 %v4672_v0, %v3835_v42 }
 0x16b   :  { %v644_v41 = vadd.f32 %v643_v1, %v623_v2  ;;  %v683_v8 = vadd.f32 %v682_v4, %v613_v43  ;;  %v4669_v2 = vld [vmem:[#allocation22_spill] sm:$0xff]  ;;  %v600_v43 = vmul.f32 %v536_v55, %v536_v55  ;;  %v694_v35 = vadd.f32 %v574_v39, %v570_v60  ;;  %v4674_v5 = vld [vmem:[#allocation40_spill] sm:$0xff]  ;;  %v4677_v60 = vld [vmem:[#allocation31_spill] sm:$0xff] }
 0x16c   :  { %v514_v1 = vsub.f32 %v4669_v2, %v3837_v28  ;;  %v658_v4 = vadd.f32 %v657_v31, %v596_v53  ;;  %v522_v2 = vsub.f32 %v4673_v44, %v3837_v28  ;;  %v629_v23 = vmul.f32 %v565_v12, %v565_v12  ;;  %v4676_v53 = vld [vmem:[#allocation43_spill] sm:$0xff] }
 0x16d   :  { %v645_v49 = vadd.f32 %v644_v41, %v627_v14  ;;  %v684_v14 = vadd.f32 %v683_v8, %v617_v59  ;;  %v518_v41 = vsub.f32 %v4671_v17, %v3837_v28  ;;  %v548_v50 = vsub.f32 %v4674_v5, %v3835_v42 }
 0x16e   :  { %v578_v51 = vmul.f32 %v514_v1, %v514_v1  ;;  %v604_v8 = vmul.f32 %v540_v11, %v540_v11  ;;  %v659_v21 = vadd.f32 %v658_v4, %v600_v43  ;;  %v552_v31 = vsub.f32 %v4676_v53, %v3835_v42  ;;  %v4678_v11 = vld [vmem:[#allocation46_spill] sm:$0xff] }
 0x16f   :  { %v646_v30 = vrot.slane %v645_v49, 4  ;;  %v685_v25 = vadd.f32 %v684_v14, %v621_v38  ;;  %v608_v38 = vmul.f32 %v544_v58, %v544_v58  ;;  %v530_v39 = vsub.f32 %v4677_v60, %v3837_v28  ;;  %v4680_v58 = vld [vmem:[#allocation49_spill] sm:$0xff] }
 0x170   :  { %v695_v17 = vadd.f32 %v694_v35, %v578_v51  ;;  %v660_v14 = vadd.f32 %v659_v21, %v604_v8  ;;  %v586_v12 = vmul.f32 %v522_v2, %v522_v2  ;;  %v612_v43 = vmul.f32 %v548_v50, %v548_v50  ;;  %v4681_v2 = vld [vmem:[#allocation35_spill] sm:$0xff] }
 0x171   :  { %v647_v34 = vadd.f32 %v646_v30, %v645_v49  ;;  %v686_v59 = vadd.f32 %v685_v25, %v625_v45  ;;  %v4675_v49 = vld [vmem:[#allocation29_spill] sm:$0xff]  ;;  %v582_v30 = vmul.f32 %v518_v41, %v518_v41  ;;  %v556_v45 = vsub.f32 %v4678_v11, %v3835_v42 }
 0x172   :  { %v526_v61 = vsub.f32 %v4675_v49, %v3837_v28  ;;  %v661_v4 = vadd.f32 %v660_v14, %v608_v38  ;;  %v4679_v41 = vld [vmem:[#allocation33_spill] sm:$0xff]  ;;  %v560_v8 = vsub.f32 %v4680_v58, %v3835_v42  ;;  %v564_v50 = vsub.f32 %v3796_v29, %v3835_v42 }
 0x173   :  { %v648_v55 = vrot.slane %v647_v34, 2  ;;  %v687_v1 = vadd.f32 %v686_v59, %v629_v23  ;;  %v696_v44 = vadd.f32 %v695_v17, %v582_v30  ;;  %v534_v51 = vsub.f32 %v4679_v41, %v3837_v28  ;;  %v4684_v29 = vld [vmem:[#allocation41_spill] sm:$0xff] }
 0x174   :  { %v590_v35 = vmul.f32 %v526_v61, %v526_v61  ;;  %v616_v23 = vmul.f32 %v552_v31, %v552_v31  ;;  %v662_v21 = vadd.f32 %v661_v4, %v612_v43  ;;  %v538_v17 = vsub.f32 %v4681_v2, %v3837_v28  ;;  %v4682_v61 = vld [vmem:[#allocation37_spill] sm:$0xff]  ;;  %v4683_v4 = vld [vmem:[#allocation39_spill] sm:$0xff] }
 0x175   :  { %v697_v25 = vadd.f32 %v696_v44, %v586_v12  ;;  %v649_v49 = vadd.f32 %v648_v55, %v647_v34  ;;  %v688_v59 = vrot.slane %v687_v1, 4  ;;  %v594_v30 = vmul.f32 %v530_v39, %v530_v39 }
 0x176   :  { %v620_v38 = vmul.f32 %v556_v45, %v556_v45  ;;  %v663_v14 = vadd.f32 %v662_v21, %v616_v23  ;;  %v542_v44 = vsub.f32 %v4682_v61, %v3837_v28  ;;  %v598_v34 = vmul.f32 %v534_v51, %v534_v51 }
 0x177   :  { %v698_v60 = vadd.f32 %v697_v25, %v590_v35  ;;  %v650_v12 = vrot.slane %v649_v49, 1  ;;  %v624_v58 = vmul.f32 %v560_v8, %v560_v8  ;;  %v689_v43 = vadd.f32 %v688_v59, %v687_v1 }
 0x178   :  { %v664_v31 = vadd.f32 %v663_v14, %v620_v38  ;;  %v546_v41 = vsub.f32 %v4683_v4, %v3837_v28  ;;  %v602_v2 = vmul.f32 %v538_v17, %v538_v17  ;;  %v628_v35 = vmul.f32 %v564_v50, %v564_v50  ;;  %v4686_v38 = vld [vmem:[#allocation47_spill] sm:$0xff] }
 0x179   :  { %v699_v55 = vadd.f32 %v698_v60, %v594_v30  ;;  %v550_v45 = vsub.f32 %v4684_v29, %v3837_v28  ;;  %v606_v23 = vmul.f32 %v542_v44, %v542_v44  ;;  %v651_v11 = vadd.f32 %v650_v12, %v649_v49  ;;  %v4685_v60 = vld [vmem:[#allocation44_spill] sm:$0xff]  ;;  %v4687_v44 = vld [vmem:[#allocation50_spill] sm:$0xff] }
 0x17a   :  { %v665_v25 = vadd.f32 %v664_v31, %v624_v58  ;;  %v690_v51 = vrot.slane %v689_v43, 2  ;;  %v554_v8 = vsub.f32 %v4685_v60, %v3837_v28  ;;  %v610_v30 = vmul.f32 %v546_v41, %v546_v41 }
 0x17b   :  { %v700_v39 = vadd.f32 %v699_v55, %v598_v34  ;;  %v558_v17 = vsub.f32 %v4686_v38, %v3837_v28  ;;  %v614_v14 = vmul.f32 %v550_v45, %v550_v45  ;;  %v715_v58 = vmul.f32 0.0078125, %v651_v11 }
 0x17c   :  { %v666_v61 = vadd.f32 %v665_v25, %v628_v35  ;;  %v691_v55 = vadd.f32 %v690_v51, %v689_v43  ;;  %v618_v49 = vmul.f32 %v554_v8, %v554_v8 }
 0x17d   :  { %v701_v21 = vadd.f32 %v700_v39, %v602_v2  ;;  %v562_v2 = vsub.f32 %v4687_v44, %v3837_v28  ;;  %v566_v39 = vsub.f32 %v3799_v24, %v3837_v28  ;;  %v622_v41 = vmul.f32 %v558_v17, %v558_v17  ;;  %v727_v17 = vld [vmem:[%s4537_s3] sm:$0xf] }
 0x17e   :  { %v667_v59 = vrot.slane %v666_v61, 4  ;;  %v719_v25 = vadd.f32 1e-05, %v715_v58 }
 0x17f   :  { %v702_v1 = vadd.f32 %v701_v21, %v606_v23  ;;  %v692_v21 = vrot.slane %v691_v55, 1  ;;  %v626_v38 = vmul.f32 %v562_v2, %v562_v2  ;;  %v630_v11 = vmul.f32 %v566_v39, %v566_v39 }
 0x180   :  { %v668_v34 = vadd.f32 %v667_v59, %v666_v61  ;;  %3271 = vrsqrt.f32 %v719_v25 }
 0x181   :  { %v703_v50 = vadd.f32 %v702_v1, %v610_v30  ;;  %v693_v51 = vadd.f32 %v692_v21, %v691_v55  ;;  %v4689_v55 = vld [vmem:[#allocation14_spill] sm:$0xff] }
 0x182   :  { %v669_v31 = vrot.slane %v668_v34, 2 }
 0x183   :  { %v704_v12 = vadd.f32 %v703_v50, %v614_v14  ;;  %v717_v50 = vmul.f32 0.0078125, %v693_v51 }
 0x184   :  { %v670_v23 = vadd.f32 %v669_v31, %v668_v34  ;;  %v4688_v34 = vld [vmem:[#allocation12_spill] sm:$0xff] }
 0x185   :  { %v705_v35 = vadd.f32 %v704_v12, %v618_v49  ;;  %v732_v2 = vrot.slane %v727_v17, %v4688_v34  ;;  %v721_v49 = vadd.f32 1e-05, %v717_v50  ;;  %v4691_v50 = vld [vmem:[#allocation15_spill] sm:$0xff] }
 0x186   :  { %v671_v30 = vrot.slane %v670_v23, 1 }
 0x187   :  { %v706_v45 = vadd.f32 %v705_v35, %v622_v41  ;;  %v736_v41 = vrot.slane %v727_v17, %v4689_v55 }
 0x188   :  { %v672_v43 = vadd.f32 %v671_v30, %v670_v23 }
 0x189   :  { %v707_v61 = vadd.f32 %v706_v45, %v626_v38 }
 0x18a   :  { %v716_v8 = vmul.f32 0.0078125, %v672_v43  ;;  %v3272_v38 = vpop.eup %3271  ;;  %v4690_v43 = vld [vmem:[#allocation13_spill] sm:$0xff] }
 0x18b   :  { %v708_v1 = vadd.f32 %v707_v61, %v630_v11  ;;  %v749_v39 = vmul.f32 %v3272_v38, %v732_v2  ;;  %v740_v51 = vrot.slane %v727_v17, %v4690_v43 }
 0x18c   :  { %v720_v14 = vadd.f32 1e-05, %v716_v8 }
 0x18d   :  { %v709_v59 = vrot.slane %v708_v1, 4  ;;  %v754_v21 = vmul.f32 %v749_v39, %v3805_v27  ;;  %v3951_v2 = vrot.slane %v749_v39, %v4688_v34 }
 0x18e   :  { %3273 = vrsqrt.f32 %v720_v14 }
 0x18f   :  { %v710_v44 = vadd.f32 %v709_v59, %v708_v1  ;;  %3275 = vrsqrt.f32 %v721_v49  ;;  %4692 = vst [vmem:[#allocation52_spill] sm:$0xff] %v3951_v2  ;;  %v3971_v39 = vmul.f32 %v3951_v2, %v3610_v18  ;;  %v3991_v18 = vmul.f32 %v3951_v2, %v3691_v32  ;;  %v4697_v32 = vld [vmem:[#allocation16_spill] sm:$0xff] }
 0x191   :  { %v711_v58 = vrot.slane %v710_v44, 2 }
 0x193   :  { %v712_v12 = vadd.f32 %v711_v58, %v710_v44  ;;  %v3390_v44 = vmov 1966171168   ;;  %v744_v58 = vrot.slane %v727_v17, %v4691_v50  ;;  %v3963_v17 = vmul.f32 %v3951_v2, %v3565_v56 }
 0x194   :  { %v765_v1 = vunpack.c.l.s4 %v3390_v44  ;;  %v3983_v56 = vmul.f32 %v3951_v2, %v3659_v26  ;;  %v4002_v26 = vmul.f32 %v3951_v2, %v3724_v37  ;;  %v4700_v37 = vld [vmem:[#allocation27_spill] sm:$0xff] }
 0x195   :  { %v713_v31 = vrot.slane %v712_v12, 1 }
 0x196   :  { %v766_v14 = vunpack.c.0.s8 %v765_v1  ;;  %v4699_v1 = vld [vmem:[#allocation25_spill] sm:$0xff] }
 0x197   :  { %v714_v35 = vadd.f32 %v713_v31, %v712_v12  ;;  %v4693_v12 = vld [vmem:[#allocation11_spill] sm:$0xff] }
 0x198   :  { %v3274_v23 = vpop.eup %3273  ;;  %v769_v38 = vsub.s32 %v766_v14, %v4693_v12 }
 0x199   :  { %v718_v25 = vmul.f32 0.0078125, %v714_v35  ;;  %v750_v45 = vmul.f32 %v3274_v23, %v736_v41  ;;  %v3276_v8 = vpop.eup %3275  ;;  %v804_v35 = vmul.f32 %v3951_v2, %v3559_v54  ;;  %v3975_v54 = vmul.f32 %v3951_v2, %v3627_v47 }
 0x19a   :  { %v751_v59 = vmul.f32 %v3276_v8, %v740_v51  ;;  %v3995_v47 = vmul.f32 %v3951_v2, %v3706_v19  ;;  %v4698_v51 = vld [vmem:[#allocation23_spill] sm:$0xff] }
 0x19b   :  { %v722_v30 = vadd.f32 1e-05, %v718_v25  ;;  %v755_v11 = vmul.f32 %v750_v45, %v3835_v42  ;;  %v808_v25 = vmul.f32 %v3951_v2, %v3550_v46  ;;  %v3979_v46 = vmul.f32 %v3951_v2, %v3642_v57 }
 0x19c   :  { %v756_v27 = vmul.f32 %v751_v59, %v3813_v16  ;;  %v799_v31 = vrot.slane %v751_v59, %v4688_v34  ;;  %v3967_v16 = vmul.f32 %v3951_v2, %v3595_v10  ;;  %v3987_v10 = vmul.f32 %v3951_v2, %v3674_v3 }
 0x19d   :  { %3277 = vrsqrt.f32 %v722_v30  ;;  %v762_v61 = vcombine.low %v754_v21, %v755_v11  ;;  %v4695_v30 = vld [vmem:[#allocation19_spill] sm:$0xff]  ;;  %v4008_v3 = vrot.slane %v750_v45, %v4688_v34 }
 0x19e   :  { %v3998_v21 = vmul.f32 %v799_v31, %v4667_v52  ;;  %v4005_v11 = vmul.f32 %v799_v31, %v4695_v30  ;;  %v4014_v19 = vmul.f32 %v799_v31, %v3574_v62  ;;  %v4017_v52 = vmul.f32 %v799_v31, %v4698_v51  ;;  %v753_v45 = vld [vmem:[%s4538_s4] sm:$0xf] }
 0x19f   :  { %v770_v23 = vrot.slane %v762_v61, %v769_v38  ;;  %4696 = vst [vmem:[#allocation40_spill] sm:$0xff] %v4008_v3  ;;  %v4011_v61 = vmul.f32 %v799_v31, %v4697_v32  ;;  %v4020_v8 = vmul.f32 %v799_v31, %v4699_v1  ;;  %v4023_v59 = vmul.f32 %v799_v31, %v4700_v37  ;;  %v4709_v32 = vld [vmem:[#allocation30_spill] sm:$0xff] }
 0x1a0   :  { %4694 = vst [vmem:[#allocation38_spill] sm:$0xff] %v3998_v21  ;;  %v4026_v14 = vmul.f32 %v799_v31, %v3645_v7  ;;  %v4032_v62 = vmul.f32 %v799_v31, %v3664_v40  ;;  %v4044_v7 = vmul.f32 %v799_v31, %v3727_v9  ;;  %v829_v51 = vmul.f32 %v4008_v3, %v4709_v32 }
 0x1a2   :  { %4702 = vst [vmem:[#allocation39_spill] sm:$0xff] %v4044_v7  ;;  %v4723_v7 = vld [vmem:[#allocation35_spill] sm:$0xff] }
 0x1a7   :  { %v3278_v49 = vpop.eup %3277 }
 0x1a8   :  { %v752_v42 = vmul.f32 %v3278_v49, %v744_v58  ;;  %v4035_v58 = vmul.f32 %v799_v31, %v3677_v6  ;;  %v4038_v49 = vmul.f32 %v799_v31, %v3696_v33  ;;  %v4705_v6 = vld [vmem:[#allocation20_spill] sm:$0xff] }
 0x1a9   :  { %v805_v33 = vmul.f32 %v4008_v3, %v4705_v6  ;;  %v4100_v6 = vmul.f32 %v4008_v3, %v4674_v5 }
 0x1aa   :  { %v757_v41 = vmul.f32 %v752_v42, %v3837_v28  ;;  %v4053_v40 = vrot.slane %v752_v42, %v4688_v34  ;;  %v821_v42 = vmul.f32 %v4008_v3, %v3616_v22  ;;  %v4712_v22 = vld [vmem:[#allocation36_spill] sm:$0xff] }
 0x1ab   :  { %v841_v37 = vmul.f32 %v4008_v3, %v4712_v22 }
 0x1ac   :  { %v763_v28 = vcombine.low %v756_v27, %v757_v41  ;;  %v4041_v27 = vmul.f32 %v799_v31, %v3709_v36  ;;  %v4047_v41 = vmul.f32 %v799_v31, %v3741_v20  ;;  %v813_v20 = vmul.f32 %v4008_v3, %v3577_v63 }
 0x1ae   :  { %v777_v57 = vrot.slane %v763_v28, %v769_v38  ;;  %4701 = vst [vmem:[#allocation43_spill] sm:$0xff] %v4041_v27  ;;  %4703 = vst [vmem:[#allocation41_spill] sm:$0xff] %v4047_v41  ;;  %v4706_v28 = vld [vmem:[#allocation17_spill] sm:$0xff]  ;;  %v3194_v41 = vld [vmem:[#allocation2 + $0x260] ss:$12 sps:$4 sm:$0xff]  }
 0x1af   :  { %v809_v36 = vmul.f32 %v4008_v3, %v4706_v28  ;;  %v4104_v28 = vmul.f32 %v4008_v3, %v4676_v53  ;;  %v4724_v27 = vld [vmem:[#allocation37_spill] sm:$0xff] }
 0x1b0   :  { %v778_v44 = vcombine.low %v770_v23, %v777_v57  ;;  %v4050_v23 = vmul.f32 %v799_v31, %v3759_v13  ;;  %v817_v13 = vmul.f32 %v4008_v3, %v3603_v15  ;;  %v4708_v57 = vld [vmem:[#allocation28_spill] sm:$0xff] }
 0x1b1   :  { %v825_v30 = vmul.f32 %v4008_v3, %v4708_v57  ;;  %v4714_v57 = vld [vmem:[#allocation46_spill] sm:$0xff] }
 0x1b2   :  { %v785_v12 = vrot.slane %v778_v44, %v769_v38  ;;  %4704 = vst [vmem:[#allocation44_spill] sm:$0xff] %v4050_v23  ;;  %v4060_v38 = vmul.f32 %v799_v31, %v3775_v48  ;;  %v4710_v44 = vld [vmem:[#allocation32_spill] sm:$0xff]  ;;  %v4711_v31 = vld [vmem:[#allocation34_spill] sm:$0xff]  ;;  %v4108_v32 = vmul.f32 %v4008_v3, %v4714_v57 }
 0x1b3   :  { %v833_v48 = vmul.f32 %v4008_v3, %v4710_v44  ;;  %v4078_v1 = vmul.f32 %v4008_v3, %v4711_v31 }
 0x1b4   :  { %4707 = vst [vmem:[#allocation13_spill] sm:$0xff] %v4060_v38  ;;  %v4062_v9 = vsub.f32 %v753_v45, %v785_v12  ;;  %v4092_v45 = vmul.f32 %v4008_v3, %v4672_v0  ;;  %v4096_v12 = vmul.f32 %v4053_v40, %v3799_v24  ;;  %v3183_v38 = vld [vmem:[#allocation2 + $0x180] ss:$12 sps:$4 sm:$0xff]  }
 0x1b6   :  { %v4082_v63 = vrot.slane %v4062_v9, %v4688_v34  ;;  %v4086_v15 = vrot.slane %v4062_v9, %v4689_v55  ;;  %4713 = vst [vmem:[#allocation15_spill] sm:$0xff] %v4096_v12  ;;  %v4715_v55 = vld [vmem:[#allocation21_spill] sm:$0xff]  ;;  %v4716_v34 = vld [vmem:[#allocation18_spill] sm:$0xff] }
 0x1b7   :  { %v4118_v53 = vmul.f32 %v4053_v40, %v4715_v55  ;;  %v4122_v57 = vmul.f32 %v4053_v40, %v4716_v34  ;;  %v4717_v12 = vld [vmem:[#allocation22_spill] sm:$0xff]  ;;  %v4718_v34 = vld [vmem:[#allocation24_spill] sm:$0xff] }
 0x1b8   :  { %v890_v44 = vadd.f32 %v4086_v15, %v805_v33  ;;  %v894_v0 = vadd.f32 %v4086_v15, %v809_v36  ;;  %v889_v31 = vadd.f32 %v4082_v63, %v804_v35  ;;  %v893_v24 = vadd.f32 %v4082_v63, %v808_v25 }
 0x1b9   :  { %v898_v22 = vadd.f32 %v4086_v15, %v813_v20  ;;  %v902_v5 = vadd.f32 %v4086_v15, %v817_v13  ;;  %v897_v25 = vadd.f32 %v4082_v63, %v3963_v17  ;;  %v901_v20 = vadd.f32 %v4082_v63, %v3967_v16  ;;  %v4720_v17 = vld [vmem:[#allocation29_spill] sm:$0xff]  ;;  %v4721_v16 = vld [vmem:[#allocation31_spill] sm:$0xff] }
 0x1ba   :  { %v954_v3 = vmax.f32 %v890_v44, 0.0  ;;  %v958_v33 = vmax.f32 %v894_v0, 0.0  ;;  %v953_v2 = vmax.f32 %v889_v31, 0.0  ;;  %v957_v36 = vmax.f32 %v893_v24, 0.0  ;;  %v3189_v0 = vld [vmem:[#allocation2 + $0x19c] ss:$12 sps:$4 sm:$0xff]  }
 0x1bb   :  { %v962_v21 = vmax.f32 %v898_v22, 0.0  ;;  %v966_v35 = vmax.f32 %v902_v5, 0.0  ;;  %v4130_v23 = vmul.f32 %v4053_v40, %v4717_v12  ;;  %v4134_v44 = vmul.f32 %v4053_v40, %v4718_v34  ;;  %v4719_v31 = vld [vmem:[#allocation26_spill] sm:$0xff] }
 0x1bc   :  { %v1018_v13 = vpack.c.bf16 %v958_v33, %v954_v3  ;;  %v1017_v55 = vpack.c.bf16 %v957_v36, %v953_v2  ;;  %v4138_v24 = vmul.f32 %v4053_v40, %v4719_v31  ;;  %v4142_v22 = vmul.f32 %v4053_v40, %v4720_v17  ;;  %v4722_v3 = vld [vmem:[#allocation33_spill] sm:$0xff] }
 0x1bd   :  { %v4146_v2 = vmul.f32 %v4053_v40, %v4721_v16  ;;  %v4150_v12 = vmul.f32 %v4053_v40, %v4722_v3  ;;  %v1022_v5 = vpack.c.bf16 %v966_v35, %v962_v21  ;;  %v3190_v33 = vld [vmem:[#allocation2 + $0x188] ss:$12 sps:$4 sm:$0xff]   ;;  %v906_v36 = vadd.f32 %v4086_v15, %v821_v42  ;;  %v3187_v21 = vld [vmem:[#allocation2 + $0x198] ss:$12 sps:$4 sm:$0xff]  }
 0x1be   :  { %1738 = vmatprep.mubr.bf16.mxu0 %v1018_v13  ;;  %1964 = vmatprep.mubr.bf16.mxu1 %v1018_v13  ;;  %v910_v34 = vadd.f32 %v4086_v15, %v825_v30  ;;  %v961_v31 = vmax.f32 %v897_v25, 0.0  ;;  %v965_v17 = vmax.f32 %v901_v20, 0.0  ;;  %v4156_v16 = vmul.f32 %v4053_v40, %v4723_v7  ;;  %v3193_v25 = vld [vmem:[#allocation2 + $0x1b4] ss:$12 sps:$4 sm:$0xff]  }
 0x1bf   :  { %1739 = vmatmul.mubr.bf16.vlgmr.msra.gmra.mrb[32].mxu0 %v1017_v55  ;;  %1965 = vmatmul.mubr.bf16.vlgmr.msra.gmra.mrb[32].mxu1 %v1017_v55  ;;  %v4160_v3 = vmul.f32 %v4053_v40, %v4724_v27  ;;  %v905_v42 = vadd.f32 %v4082_v63, %v3971_v39  ;;  %v909_v30 = vadd.f32 %v4082_v63, %v3975_v54  ;;  %v970_v20 = vmax.f32 %v906_v36, 0.0  ;;  %v3198_v39 = vld [vmem:[#allocation2 + $0x1a0] ss:$12 sps:$4 sm:$0xff]  }
 0x1c0   :  { %1820 = vmatpush1.bf16.msra.mxu0 %v3183_v38  ;;  %1748 = vmatprep.mubr.bf16.mxu0 %v1022_v5  ;;  %v914_v35 = vadd.f32 %v4086_v15, %v829_v51  ;;  %v918_v7 = vadd.f32 %v4086_v15, %v833_v48  ;;  %v913_v27 = vadd.f32 %v4082_v63, %v3979_v46  ;;  %v974_v13 = vmax.f32 %v910_v34, 0.0 }
 0x1c1   :  { %1972 = vmatprep.mubr.bf16.mxu1 %v1022_v5  ;;  %1821 = vmatprep.subr.bf16.mxu0 %v3189_v0  ;;  %v917_v38 = vadd.f32 %v4082_v63, %v3983_v56  ;;  %v922_v54 = vadd.f32 %v4086_v15, %v4078_v1  ;;  %v926_v51 = vadd.f32 %v4086_v15, %v841_v37  ;;  %v3191_v0 = vld [vmem:[#allocation2 + $0x1b0] ss:$12 sps:$4 sm:$0xff]   ;;  %v969_v5 = vmax.f32 %v905_v42, 0.0 }
 0x1c2   :  { %2855 = vmatpush3.bf16.msra.mxu1 %v3190_v33  ;;  %v1021_v55 = vpack.c.bf16 %v965_v17, %v961_v31  ;;  %v4177_v48 = vmul.f32 %v4053_v40, %v4683_v4  ;;  %v4181_v46 = vmul.f32 %v4053_v40, %v4684_v29  ;;  %v4185_v56 = vmul.f32 %v4053_v40, %v4685_v60  ;;  %v3197_v4 = vld [vmem:[#allocation2 + $0x1cc] ss:$12 sps:$4 sm:$0xff]  }
 0x1c3   :  { %2856 = vmatprep.subr.bf16.mxu1 %v3194_v41  ;;  %v973_v1 = vmax.f32 %v909_v30, 0.0  ;;  %v921_v37 = vadd.f32 %v4082_v63, %v3987_v10  ;;  %v925_v41 = vadd.f32 %v4082_v63, %v3991_v18  ;;  %v978_v33 = vmax.f32 %v914_v35, 0.0  ;;  %v3202_v17 = vld [vmem:[#allocation2 + $0x278] ss:$12 sps:$4 sm:$0xff]  }
 0x1c4   :  { %1822 = vmatpush1.bf16.msra.mxu0 %v3187_v21  ;;  %v982_v36 = vmax.f32 %v918_v7, 0.0  ;;  %v977_v29 = vmax.f32 %v913_v27, 0.0  ;;  %v981_v34 = vmax.f32 %v917_v38, 0.0  ;;  %v4193_v60 = vrot.slane %v4062_v9, %v4691_v50  ;;  %v3206_v10 = vld [vmem:[#allocation2 + $0x1b8] ss:$12 sps:$4 sm:$0xff]  }
 0x1c5   :  { %1823 = vmatprep.subr.bf16.mxu0 %v3193_v25  ;;  %v1026_v31 = vpack.c.bf16 %v974_v13, %v970_v20  ;;  %v986_v21 = vmax.f32 %v922_v54, 0.0  ;;  %v990_v42 = vmax.f32 %v926_v51, 0.0  ;;  %v4197_v18 = vadd.f32 %v4086_v15, %v4092_v45  ;;  %v4725_v35 = vld [vmem:[#allocation47_spill] sm:$0xff]  ;;  %v3195_v7 = vld [vmem:[#allocation2 + $0x1c8] ss:$12 sps:$4 sm:$0xff]   ;;  %v4726_v45 = vld [vmem:[#allocation50_spill] sm:$0xff] }
 0x1c6   :  { %2857 = vmatpush3.bf16.msra.mxu1 %v3198_v39  ;;  %v4201_v30 = vadd.f32 %v4086_v15, %v4100_v6  ;;  %v4205_v50 = vmul.f32 %v4053_v40, %v4725_v35  ;;  %v4209_v25 = vrot.slane %v4062_v9, %v4690_v43  ;;  %v3210_v27 = vld [vmem:[#allocation2 + $0x290] ss:$12 sps:$4 sm:$0xff]   ;;  %v985_v38 = vmax.f32 %v921_v37, 0.0 }
 0x1c7   :  { %1749 = vmatmul.mubr.bf16.gmra.mrb[36].mxu0 %v1021_v55  ;;  %1973 = vmatmul.mubr.bf16.gmra.mrb[36].mxu1 %v1021_v55  ;;  %v989_v20 = vmax.f32 %v925_v41, 0.0  ;;  %v4213_v13 = vmul.f32 %v4053_v40, %v4726_v45  ;;  %v3201_v6 = vld [vmem:[#allocation2 + $0x1e4] ss:$12 sps:$4 sm:$0xff]   ;;  %v1025_v39 = vpack.c.bf16 %v973_v1, %v969_v5  ;;  %v1030_v54 = vpack.c.bf16 %v982_v36, %v978_v33  ;;  %v3199_v41 = vld [vmem:[#allocation2 + $0x1e0] ss:$12 sps:$4 sm:$0xff]  }
 0x1c8   :  { %1824 = vmatpush1.bf16.msra.mxu0 %v3191_v0  ;;  %1758 = vmatprep.mubr.bf16.mxu0 %v1026_v31  ;;  %v4215_v51 = vpack.c.bf16 %v981_v34, %v977_v29  ;;  %v4217_v9 = vpack.c.bf16 %v990_v42, %v986_v21  ;;  %v4221_v55 = vadd.f32 %v4082_v63, %v3995_v47  ;;  %v994_v5 = vmax.f32 %v4197_v18, 0.0  ;;  %v3205_v36 = vld [vmem:[#allocation2 + $0x1fc] ss:$12 sps:$4 sm:$0xff]   ;;  %v3219_v18 = vld [vmem:[#allocation2 + $0x258] ss:$12 sps:$4 sm:$0xff]  }
 0x1c9   :  { %1980 = vmatprep.mubr.bf16.mxu1 %v1026_v31  ;;  %1825 = vmatprep.subr.bf16.mxu0 %v3197_v4  ;;  %v4225_v0 = vadd.f32 %v4082_v63, %v4002_v26  ;;  %v892_v40 = vadd.f32 %v4193_v60, %v4118_v53  ;;  %v998_v1 = vmax.f32 %v4201_v30, 0.0  ;;  %v4233_v37 = vadd.f32 %v4086_v15, %v4104_v28  ;;  %v3214_v31 = vld [vmem:[#allocation2 + $0x1d0] ss:$12 sps:$4 sm:$0xff]   ;;  %v3225_v30 = vld [vmem:[#allocation2 + $0x274] ss:$12 sps:$4 sm:$0xff]  }
 0x1ca   :  { %2858 = vmatprep.subr.bf16.mxu1 %v3202_v17  ;;  %v896_v47 = vadd.f32 %v4193_v60, %v4122_v57  ;;  %v4237_v26 = vpack.c.bf16 %v989_v20, %v985_v38  ;;  %v891_v53 = vadd.f32 %v4209_v25, %v4005_v11  ;;  %v895_v33 = vadd.f32 %v4209_v25, %v4011_v61  ;;  %v3209_v38 = vld [vmem:[#allocation2 + $0x214] ss:$12 sps:$4 sm:$0xff]  }
 0x1cb   :  { %2859 = vmatpush3.bf16.msra.mxu1 %v3206_v10  ;;  %v956_v4 = vmax.f32 %v892_v40, 0.0  ;;  %v4245_v28 = vadd.f32 %v4086_v15, %v4108_v32  ;;  %v900_v57 = vadd.f32 %v4193_v60, %v4130_v23  ;;  %v904_v34 = vadd.f32 %v4193_v60, %v4134_v44  ;;  %v3218_v32 = vld [vmem:[#allocation2 + $0x2a8] ss:$12 sps:$4 sm:$0xff]   ;;  %v3203_v44 = vld [vmem:[#allocation2 + $0x1f8] ss:$12 sps:$4 sm:$0xff]  }
 0x1cc   :  { %1826 = vmatpush1.bf16.msra.mxu0 %v3195_v7  ;;  %2860 = vmatprep.subr.bf16.mxu1 %v3210_v27  ;;  %v960_v29 = vmax.f32 %v896_v47, 0.0  ;;  %v955_v17 = vmax.f32 %v891_v53, 0.0  ;;  %v959_v21 = vmax.f32 %v895_v33, 0.0  ;;  %v899_v11 = vadd.f32 %v4209_v25, %v4014_v19  ;;  %v3207_v53 = vld [vmem:[#allocation2 + $0x210] ss:$12 sps:$4 sm:$0xff]  }
 0x1cd   :  { %1827 = vmatprep.subr.bf16.mxu0 %v3201_v6  ;;  %v903_v61 = vadd.f32 %v4209_v25, %v4017_v52  ;;  %v964_v10 = vmax.f32 %v900_v57, 0.0  ;;  %v968_v35 = vmax.f32 %v904_v34, 0.0  ;;  %v908_v23 = vadd.f32 %v4193_v60, %v4138_v24 }
 0x1ce   :  { %v4255_v42 = vpack.c.bf16 %v960_v29, %v956_v4  ;;  %v4259_v7 = vpack.c.bf16 %v959_v21, %v955_v17  ;;  %v963_v27 = vmax.f32 %v899_v11, 0.0  ;;  %v912_v52 = vadd.f32 %v4193_v60, %v4142_v22 }
 0x1cf   :  { %1759 = vmatmul.mubr.bf16.gmra.mrb[40].mxu0 %v1025_v39  ;;  %1981 = vmatmul.mubr.bf16.gmra.mrb[40].mxu1 %v1025_v39  ;;  %v967_v19 = vmax.f32 %v903_v61, 0.0  ;;  %v4263_v20 = vpack.c.bf16 %v968_v35, %v964_v10  ;;  %v972_v45 = vmax.f32 %v908_v23, 0.0  ;;  %v907_v6 = vadd.f32 %v4209_v25, %v4020_v8  ;;  %v3222_v39 = vld [vmem:[#allocation2 + $0x1e8] ss:$12 sps:$4 sm:$0xff]   ;;  %v3230_v61 = vld [vmem:[#allocation2 + $0x200] ss:$12 sps:$4 sm:$0xff]  }
 0x1d0   :  { %1828 = vmatpush1.bf16.msra.mxu0 %v3199_v41  ;;  %1768 = vmatprep.mubr.bf16.mxu0 %v1030_v54  ;;  %v911_v24 = vadd.f32 %v4209_v25, %v4023_v59  ;;  %v976_v47 = vmax.f32 %v912_v52, 0.0  ;;  %v916_v22 = vadd.f32 %v4193_v60, %v4146_v2  ;;  %v915_v8 = vadd.f32 %v4209_v25, %v4026_v14  ;;  %v3234_v23 = vld [vmem:[#allocation2 + $0x2d8] ss:$12 sps:$4 sm:$0xff]  }
 0x1d1   :  { %1988 = vmatprep.mubr.bf16.mxu1 %v1030_v54  ;;  %1829 = vmatprep.subr.bf16.mxu0 %v3205_v36  ;;  %v4269_v40 = vpack.c.bf16 %v967_v19, %v963_v27  ;;  %v920_v54 = vadd.f32 %v4193_v60, %v4150_v12  ;;  %v971_v41 = vmax.f32 %v907_v6, 0.0  ;;  %v919_v59 = vadd.f32 %v4209_v25, %v4032_v62  ;;  %v3213_v12 = vld [vmem:[#allocation2 + $0x22c] ss:$12 sps:$4 sm:$0xff]   ;;  %v4727_v27 = vld [vmem:[#allocation43_spill] sm:$0xff] }
 0x1d2   :  { %2861 = vmatpush3.bf16.msra.mxu1 %v3214_v31  ;;  %v975_v4 = vmax.f32 %v911_v24, 0.0  ;;  %v4279_v33 = vpack.c.bf16 %v976_v47, %v972_v45  ;;  %v980_v36 = vmax.f32 %v916_v22, 0.0  ;;  %v924_v2 = vadd.f32 %v4193_v60, %v4156_v16  ;;  %v3226_v62 = vld [vmem:[#allocation2 + $0x2c0] ss:$12 sps:$4 sm:$0xff]  }
 0x1d3   :  { %2862 = vmatprep.subr.bf16.mxu1 %v3218_v32  ;;  %v984_v29 = vmax.f32 %v920_v54, 0.0  ;;  %v979_v34 = vmax.f32 %v915_v8, 0.0  ;;  %v983_v31 = vmax.f32 %v919_v59, 0.0  ;;  %v928_v14 = vadd.f32 %v4193_v60, %v4160_v3  ;;  %v4728_v19 = vld [vmem:[#allocation39_spill] sm:$0xff]  ;;  %v4730_v8 = vld [vmem:[#allocation44_spill] sm:$0xff] }
 0x1d4   :  { %1830 = vmatpush1.bf16.msra.mxu0 %v3203_v44  ;;  %v4283_v57 = vpack.c.bf16 %v975_v4, %v971_v41  ;;  %v988_v21 = vmax.f32 %v924_v2, 0.0  ;;  %v923_v11 = vadd.f32 %v4209_v25, %v4035_v58  ;;  %v927_v16 = vadd.f32 %v4209_v25, %v4038_v49  ;;  %v3211_v58 = vld [vmem:[#allocation2 + $0x228] ss:$12 sps:$4 sm:$0xff]  }
 0x1d5   :  { %1831 = vmatprep.subr.bf16.mxu0 %v3209_v38  ;;  %v4287_v17 = vpack.c.bf16 %v984_v29, %v980_v36  ;;  %v4295_v32 = vpack.c.bf16 %v983_v31, %v979_v34  ;;  %v992_v10 = vmax.f32 %v928_v14, 0.0  ;;  %v932_v3 = vadd.f32 %v4193_v60, %v4177_v48  ;;  %v3217_v48 = vld [vmem:[#allocation2 + $0x244] ss:$12 sps:$4 sm:$0xff]  }
 0x1d6   :  { %2863 = vmatpush3.bf16.msra.mxu1 %v3222_v39  ;;  %v936_v35 = vadd.f32 %v4193_v60, %v4181_v46  ;;  %v987_v49 = vmax.f32 %v923_v11, 0.0  ;;  %v991_v44 = vmax.f32 %v927_v16, 0.0  ;;  %v935_v52 = vadd.f32 %v4209_v25, %v4728_v19  ;;  %v4729_v41 = vld [vmem:[#allocation41_spill] sm:$0xff]  ;;  %v4735_v19 = vld [vmem:[#allocation52_spill] sm:$0xff] }
 0x1d7   :  { %1769 = vmatmul.mubr.bf16.gmra.mrb[44].mxu0 %v4215_v51  ;;  %1989 = vmatmul.mubr.bf16.gmra.mrb[44].mxu1 %v4215_v51  ;;  %v931_v51 = vadd.f32 %v4209_v25, %v4727_v27  ;;  %v4307_v38 = vpack.c.bf16 %v992_v10, %v988_v21  ;;  %v996_v46 = vmax.f32 %v932_v3, 0.0  ;;  %v940_v6 = vadd.f32 %v4193_v60, %v4185_v56  ;;  %v3215_v56 = vld [vmem:[#allocation2 + $0x240] ss:$12 sps:$4 sm:$0xff]   ;;  %v4732_v14 = vld [vmem:[#allocation13_spill] sm:$0xff]  ;;  %v4733_v21 = vld [vmem:[#allocation38_spill] sm:$0xff] }
 0x1d8   :  { %1832 = vmatpush1.bf16.msra.mxu0 %v3207_v53  ;;  %1778 = vmatprep.mubr.bf16.mxu0 %v4217_v9  ;;  %v1000_v45 = vmax.f32 %v936_v35, 0.0  ;;  %v4311_v24 = vpack.c.bf16 %v991_v44, %v987_v49  ;;  %v999_v47 = vmax.f32 %v935_v52, 0.0  ;;  %v944_v22 = vadd.f32 %v4193_v60, %v4205_v50  ;;  %v4731_v50 = vld [vmem:[#allocation15_spill] sm:$0xff]  ;;  %v3242_v3 = vld [vmem:[#allocation2 + $0x2f0] ss:$12 sps:$4 sm:$0xff]  }
 0x1d9   :  { %1996 = vmatprep.mubr.bf16.mxu1 %v4217_v9  ;;  %1833 = vmatprep.subr.bf16.mxu0 %v3213_v12  ;;  %v995_v39 = vmax.f32 %v931_v51, 0.0  ;;  %v1004_v9 = vmax.f32 %v940_v6, 0.0  ;;  %v939_v4 = vadd.f32 %v4209_v25, %v4729_v41  ;;  %v943_v59 = vadd.f32 %v4209_v25, %v4730_v8  ;;  %v3221_v12 = vld [vmem:[#allocation2 + $0x25c] ss:$12 sps:$4 sm:$0xff]  }
 0x1da   :  { %2864 = vmatprep.subr.bf16.mxu1 %v3226_v62  ;;  %v4315_v54 = vpack.c.bf16 %v1000_v45, %v996_v46  ;;  %v1008_v36 = vmax.f32 %v944_v22, 0.0  ;;  %v948_v29 = vadd.f32 %v4193_v60, %v4213_v13  ;;  %v952_v2 = vadd.f32 %v4193_v60, %v4731_v50  ;;  %v3246_v27 = vld [vmem:[#allocation2 + $0x230] ss:$12 sps:$4 sm:$0xff]   ;;  %v4738_v6 = vld [vmem:[#allocation40_spill] sm:$0xff] }
 0x1db   :  { %2865 = vmatpush3.bf16.msra.mxu1 %v3230_v61  ;;  %v4321_v53 = vpack.c.bf16 %v999_v47, %v995_v39  ;;  %v1003_v34 = vmax.f32 %v939_v4, 0.0  ;;  %v1007_v31 = vmax.f32 %v943_v59, 0.0  ;;  %v947_v62 = vadd.f32 %v4209_v25, %v4732_v14  ;;  %v3238_v61 = vld [vmem:[#allocation2 + $0x218] ss:$12 sps:$4 sm:$0xff]   ;;  %v4737_v45 = vld [vmem:[#allocation53_spill] sm:$0xff] }
 0x1dc   :  { %1834 = vmatpush1.bf16.msra.mxu0 %v3211_v58  ;;  %2866 = vmatprep.subr.bf16.mxu1 %v3234_v23  ;;  %v951_v11 = vadd.f32 %v4209_v25, %v4733_v21  ;;  %v1038_v16 = vpack.c.bf16 %v998_v1, %v994_v5  ;;  %v4335_v13 = vpack.c.bf16 %v1008_v36, %v1004_v9  ;;  %v1012_v10 = vmax.f32 %v948_v29, 0.0  ;;  %v4734_v51 = vld [vmem:[#allocation42_spill] sm:$0xff]  ;;  %v4739_v39 = vld [vmem:[#allocation49_spill] sm:$0xff] }
 0x1dd   :  { %1835 = vmatprep.subr.bf16.mxu0 %v3217_v48  ;;  %v1016_v60 = vmax.f32 %v952_v2, 0.0  ;;  %v4339_v35 = vpack.c.bf16 %v1007_v31, %v1003_v34  ;;  %v1011_v58 = vmax.f32 %v947_v62, 0.0  ;;  %v993_v5 = vmax.f32 %v4221_v55, 0.0  ;;  %v4736_v48 = vld [vmem:[#allocation45_spill] sm:$0xff]  ;;  %v4741_v31 = vld [vmem:[#allocation48_spill] sm:$0xff] }
 0x1de   :  { %v1015_v23 = vmax.f32 %v951_v11, 0.0  ;;  %v997_v1 = vmax.f32 %v4225_v0, 0.0  ;;  %v1006_v44 = vmax.f32 %v4245_v28, 0.0  ;;  %v852_v52 = vmul.f32 %v4735_v19, %v4734_v51  ;;  %v3223_v0 = vld [vmem:[#allocation2 + $0x270] ss:$12 sps:$4 sm:$0xff]   ;;  %v3268_v51 = vld [vmem:[#allocation5 + $0xa8] sm:$0xff]  }
 0x1df   :  { %1779 = vmatmul.mubr.bf16.gmra.mrb[48].mxu0 %v4237_v26  ;;  %1997 = vmatmul.mubr.bf16.gmra.mrb[48].mxu1 %v4237_v26  ;;  %v4341_v25 = vpack.c.bf16 %v1016_v60, %v1012_v10  ;;  %v1002_v26 = vmax.f32 %v4233_v37, 0.0  ;;  %v856_v46 = vmul.f32 %v4735_v19, %v4736_v48  ;;  %v865_v55 = vmul.f32 %v4738_v6, %v4737_v45  ;;  %v3229_v28 = vld [vmem:[#allocation2 + $0x28c] ss:$12 sps:$4 sm:$0xff]   ;;  %v3227_v59 = vld [vmem:[#allocation2 + $0x288] ss:$12 sps:$4 sm:$0xff]  }
 0x1e0   :  { %1836 = vmatpush1.bf16.msra.mxu0 %v3215_v56  ;;  %1788 = vmatprep.mubr.bf16.mxu0 %v1038_v16  ;;  %v4345_v49 = vpack.c.bf16 %v1015_v23, %v1011_v58  ;;  %v861_v47 = vmul.f32 %v4738_v6, %v4739_v39  ;;  %v1037_v37 = vpack.c.bf16 %v997_v1, %v993_v5  ;;  %v3233_v56 = vld [vmem:[#allocation2 + $0x2a4] ss:$12 sps:$4 sm:$0xff]   ;;  %v3237_v21 = vld [vmem:[#allocation2 + $0x2bc] ss:$12 sps:$4 sm:$0xff]   ;;  %v3241_v60 = vld [vmem:[#allocation2 + $0x2d4] ss:$12 sps:$4 sm:$0xff]  }
 0x1e1   :  { %2004 = vmatprep.mubr.bf16.mxu1 %v1038_v16  ;;  %1837 = vmatprep.subr.bf16.mxu0 %v3221_v12  ;;  %v937_v22 = vadd.f32 %v4082_v63, %v852_v52  ;;  %v941_v9 = vadd.f32 %v4082_v63, %v856_v46  ;;  %v1042_v41 = vpack.c.bf16 %v1006_v44, %v1002_v26  ;;  %v4740_v12 = vld [vmem:[#allocation51_spill] sm:$0xff]  ;;  %v3239_v23 = vld [vmem:[#allocation2 + $0x2d0] ss:$12 sps:$4 sm:$0xff]  }
 0x1e2   :  { %2867 = vmatpush3.bf16.msra.mxu1 %v3238_v61  ;;  %v946_v4 = vadd.f32 %v4086_v15, %v861_v47  ;;  %v950_v8 = vadd.f32 %v4086_v15, %v865_v55  ;;  %v864_v34 = vmul.f32 %v4735_v19, %v4740_v12  ;;  %v860_v14 = vmul.f32 %v4735_v19, %v4741_v31  ;;  %v3231_v15 = vld [vmem:[#allocation2 + $0x2a0] ss:$12 sps:$4 sm:$0xff]   ;;  %v3235_v10 = vld [vmem:[#allocation2 + $0x2b8] ss:$12 sps:$4 sm:$0xff]   ;;  %v3262_v5 = vld [vmem:[#allocation5 + $0x30] sm:$0xff]  }
 0x1e3   :  { %2868 = vmatprep.subr.bf16.mxu1 %v3242_v3  ;;  %v1001_v36 = vmax.f32 %v937_v22, 0.0  ;;  %v1005_v29 = vmax.f32 %v941_v9, 0.0  ;;  %v3263_v1 = vld [vmem:[#allocation5 + $0x90] sm:$0xff]   ;;  %v3265_v26 = vld [vmem:[#allocation5 + $0x78] sm:$0xff]  }
 0x1e4   :  { %1838 = vmatpush1.bf16.msra.mxu0 %v3219_v18  ;;  %v1010_v50 = vmax.f32 %v946_v4, 0.0  ;;  %v1014_v2 = vmax.f32 %v950_v8, 0.0  ;;  %v945_v11 = vadd.f32 %v4082_v63, %v860_v14  ;;  %v949_v16 = vadd.f32 %v4082_v63, %v864_v34  ;;  %v3243_v63 = vld [vmem:[#allocation2 + $0x2e8] ss:$12 sps:$4 sm:$0xff]   ;;  %v3266_v44 = vld [vmem:[#allocation5 + $0x38] sm:$0xff]  }
 0x1e5   :  { %1839 = vmatprep.subr.bf16.mxu0 %v3225_v30  ;;  %v1041_v62 = vpack.c.bf16 %v1005_v29, %v1001_v36  ;;  %v3245_v30 = vld [vmem:[#allocation2 + $0x2ec] ss:$12 sps:$4 sm:$0xff]   ;;  %v3269_v19 = vld [vmem:[#allocation5 + $0xb0] sm:$0xff]  }
 0x1e6   :  { %2869 = vmatpush3.bf16.msra.mxu1 %v3246_v27  ;;  %v1046_v61 = vpack.c.bf16 %v1014_v2, %v1010_v50  ;;  %v1009_v3 = vmax.f32 %v945_v11, 0.0  ;;  %v1013_v58 = vmax.f32 %v949_v16, 0.0  ;;  %v3267_v27 = vld [vmem:[#allocation5 + $0xa0] sm:$0xff]   ;;  %v3270_v52 = vld [vmem:[#allocation5 + $0xb8] sm:$0xff]  }
 0x1e7   :  { %1789 = vmatmul.mubr.bf16.gmra.mrb[52].mxu0 %v1037_v37  ;;  %2005 = vmatmul.mubr.bf16.gmra.mrb[52].mxu1 %v1037_v37 }
 0x1e8   :  { %1840 = vmatpush1.bf16.msra.mxu0 %v3223_v0  ;;  %1798 = vmatprep.mubr.bf16.mxu0 %v1042_v41  ;;  %v1045_v18 = vpack.c.bf16 %v1013_v58, %v1009_v3 }
 0x1e9   :  { %2012 = vmatprep.mubr.bf16.mxu1 %v1042_v41  ;;  %1841 = vmatprep.subr.bf16.mxu0 %v3229_v28 }
 0x1ec   :  { %1842 = vmatpush1.bf16.msra.mxu0 %v3227_v59 }
 0x1ed   :  { %1843 = vmatprep.subr.bf16.mxu0 %v3233_v56 }
 0x1ef   :  { %1799 = vmatmul.mubr.bf16.gmra.mrb[56].mxu0 %v1041_v62  ;;  %2013 = vmatmul.mubr.bf16.gmra.mrb[56].mxu1 %v1041_v62 }
 0x1f0   :  { %1844 = vmatpush1.bf16.msra.mxu0 %v3231_v15  ;;  %1808 = vmatprep.mubr.bf16.mxu0 %v1046_v61 }
 0x1f1   :  { %2020 = vmatprep.mubr.bf16.mxu1 %v1046_v61  ;;  %1845 = vmatprep.subr.bf16.mxu0 %v3237_v21 }
 0x1f4   :  { %1846 = vmatpush1.bf16.msra.mxu0 %v3235_v10 }
 0x1f5   :  { %1847 = vmatprep.subr.bf16.mxu0 %v3241_v60 }
 0x1f7   :  { %1809 = vmatmul.mubr.bf16.gmra.mrb[60].mxu0 %v1045_v18  ;;  %2021 = vmatmul.mubr.bf16.gmra.mrb[60].mxu1 %v1045_v18 }
 0x1f8   :  { %1848 = vmatpush1.bf16.msra.mxu0 %v3239_v23  ;;  %1851 = vmatprep.mubr.bf16.mxu0 %v4255_v42 }
 0x1f9   :  { %2061 = vmatprep.mubr.bf16.mxu1 %v4255_v42  ;;  %1849 = vmatprep.subr.bf16.mxu0 %v3245_v30  ;;  %v3247_v42 = vld [vmem:[#allocation5 + $0x40] sm:$0xff]  }
 0x1fc   :  { %1850 = vmatpush1.bf16.msra.mxu0 %v3243_v63 }
 0x1fd   :  { %2918 = vmatprep.subr.bf16.mxu0 %v3247_v42 }
 0x1ff   :  { %1852 = vmatmul.mubr.bf16.vlgmr.msra.gmra.mrb[32].mxu0 %v4259_v7  ;;  %2062 = vmatmul.mubr.bf16.vlgmr.msra.gmra.mrb[64].mxu1 %v4259_v7  ;;  %v3248_v7 = vld [vmem:[#allocation5] sm:$0xff]  }
 0x200   :  { %1861 = vmatprep.mubr.bf16.mxu0 %v4263_v20  ;;  %2069 = vmatprep.mubr.bf16.mxu1 %v4263_v20  ;;  %v3249_v20 = vld [vmem:[#allocation5 + $0x48] sm:$0xff]  }
 0x201   :  { %2919 = vmatpush3.bf16.msra.mxu0 %v3248_v7 }
 0x202   :  { %2920 = vmatprep.subr.bf16.mxu0 %v3249_v20 }
 0x207   :  { %1862 = vmatmul.mubr.bf16.gmra.mrb[36].mxu0 %v4269_v40  ;;  %2070 = vmatmul.mubr.bf16.gmra.mrb[68].mxu1 %v4269_v40  ;;  %v3250_v40 = vld [vmem:[#allocation5 + $0x8] sm:$0xff]  }
 0x208   :  { %1871 = vmatprep.mubr.bf16.mxu0 %v4279_v33  ;;  %2077 = vmatprep.mubr.bf16.mxu1 %v4279_v33  ;;  %v3251_v33 = vld [vmem:[#allocation5 + $0x50] sm:$0xff]  }
 0x209   :  { %2921 = vmatpush3.bf16.msra.mxu0 %v3250_v40 }
 0x20a   :  { %2922 = vmatprep.subr.bf16.mxu0 %v3251_v33 }
 0x20f   :  { %1872 = vmatmul.mubr.bf16.gmra.mrb[40].mxu0 %v4283_v57  ;;  %2078 = vmatmul.mubr.bf16.gmra.mrb[72].mxu1 %v4283_v57  ;;  %v3252_v57 = vld [vmem:[#allocation5 + $0x10] sm:$0xff]  }
 0x210   :  { %1881 = vmatprep.mubr.bf16.mxu0 %v4287_v17  ;;  %2085 = vmatprep.mubr.bf16.mxu1 %v4287_v17  ;;  %v3253_v17 = vld [vmem:[#allocation5 + $0x58] sm:$0xff]  }
 0x211   :  { %2923 = vmatpush3.bf16.msra.mxu0 %v3252_v57 }
 0x212   :  { %2924 = vmatprep.subr.bf16.mxu0 %v3253_v17 }
 0x217   :  { %1882 = vmatmul.mubr.bf16.gmra.mrb[44].mxu0 %v4295_v32  ;;  %2086 = vmatmul.mubr.bf16.gmra.mrb[76].mxu1 %v4295_v32  ;;  %v3254_v32 = vld [vmem:[#allocation5 + $0x18] sm:$0xff]  }
 0x218   :  { %1891 = vmatprep.mubr.bf16.mxu0 %v4307_v38  ;;  %2093 = vmatprep.mubr.bf16.mxu1 %v4307_v38  ;;  %v3255_v38 = vld [vmem:[#allocation5 + $0x60] sm:$0xff]  }
 0x219   :  { %2925 = vmatpush3.bf16.msra.mxu0 %v3254_v32  ;;  %v1177_v32 = vld [vmem:[%s4540_s6] sm:$0x7] }
 0x21a   :  { %2926 = vmatprep.subr.bf16.mxu0 %v3255_v38 }
 0x21f   :  { %1892 = vmatmul.mubr.bf16.gmra.mrb[48].mxu0 %v4311_v24  ;;  %2094 = vmatmul.mubr.bf16.gmra.mrb[80].mxu1 %v4311_v24  ;;  %v3256_v24 = vld [vmem:[#allocation5 + $0x20] sm:$0xff]  }
 0x220   :  { %1901 = vmatprep.mubr.bf16.mxu0 %v4315_v54  ;;  %2101 = vmatprep.mubr.bf16.mxu1 %v4315_v54  ;;  %v3257_v54 = vld [vmem:[#allocation5 + $0x80] sm:$0xff]  }
 0x221   :  { %2927 = vmatpush3.bf16.msra.mxu0 %v3256_v24  ;;  %2998 = vmatprep.subr.bf16.mxu1 %v3257_v54 }
 0x222   :  { %2999 = vmatpush3.bf16.msra.mxu1 %v3257_v54  ;;  %v4742_v54 = vld [vmem:[#allocation12_spill] sm:$0xff] }
 0x227   :  { %1902 = vmatmul.mubr.bf16.gmra.mrb[52].mxu0 %v4321_v53  ;;  %2102 = vmatmul.mubr.bf16.gmra.mrb[84].mxu1 %v4321_v53  ;;  %v3258_v53 = vld [vmem:[#allocation5 + $0x68] sm:$0xff]  }
 0x228   :  { %1911 = vmatprep.mubr.bf16.mxu0 %v4335_v13  ;;  %2109 = vmatprep.mubr.bf16.mxu1 %v4335_v13  ;;  %v3259_v13 = vld [vmem:[#allocation5 + $0x28] sm:$0xff]  }
 0x229   :  { %2928 = vmatprep.subr.bf16.mxu0 %v3258_v53  ;;  %v4431_v53 = vrot.slane %v1177_v32, %v4742_v54 }
 0x22a   :  { %2929 = vmatpush3.bf16.msra.mxu0 %v3259_v13  ;;  %v4434_v13 = vrot.slane %v1177_v32, %v4690_v43 }
 0x22f   :  { %1912 = vmatmul.mubr.bf16.gmra.mrb[56].mxu0 %v4339_v35  ;;  %2110 = vmatmul.mubr.bf16.gmra.mrb[88].mxu1 %v4339_v35  ;;  %v3260_v35 = vld [vmem:[#allocation5 + $0x88] sm:$0xff]  }
 0x230   :  { %1921 = vmatprep.mubr.bf16.mxu0 %v4341_v25  ;;  %2117 = vmatprep.mubr.bf16.mxu1 %v4341_v25  ;;  %v3261_v25 = vld [vmem:[#allocation5 + $0x70] sm:$0xff]  }
 0x231   :  { %3000 = vmatprep.subr.bf16.mxu1 %v3260_v35  ;;  %2930 = vmatprep.subr.bf16.mxu0 %v3261_v25 }
 0x232   :  { %3001 = vmatpush3.bf16.msra.mxu1 %v3260_v35  ;;  %2931 = vmatpush3.bf16.msra.mxu0 %v3262_v5  ;;  %v4743_v35 = vld [vmem:[#allocation14_spill] sm:$0xff] }
 0x233   :  { %3002 = vmatprep.subr.bf16.mxu1 %v3263_v1  ;;  %2932 = vmatprep.subr.bf16.mxu0 %v3265_v26  ;;  %v4437_v25 = vrot.slane %v1177_v32, %v4743_v35 }
 0x236   :  { %3003 = vmatpush3.bf16.msra.mxu1 %v3263_v1  ;;  %2933 = vmatpush3.bf16.msra.mxu0 %v3266_v44 }
 0x237   :  { %1922 = vmatmul.mubr.bf16.gmra.mrb[60].mxu0 %v4345_v49  ;;  %2118 = vmatmul.mubr.bf16.gmra.mrb[92].mxu1 %v4345_v49  ;;  %v3264_v49 = vld [vmem:[#allocation5 + $0x98] sm:$0xff]  }
 0x238   :  { %3004 = vmatprep.subr.bf16.mxu1 %v3264_v49 }
 0x23a   :  { %3005 = vmatpush3.bf16.msra.mxu1 %v3264_v49 }
 0x23b   :  { %3006 = vmatprep.subr.bf16.mxu1 %v3267_v27 }
 0x23e   :  { %3007 = vmatpush3.bf16.msra.mxu1 %v3267_v27 }
 0x23f   :  { %3008 = vmatprep.subr.bf16.mxu1 %v3268_v51 }
 0x242   :  { %3009 = vmatpush3.bf16.msra.mxu1 %v3268_v51 }
 0x243   :  { %3010 = vmatprep.subr.bf16.mxu1 %v3269_v19 }
 0x246   :  { %3011 = vmatpush3.bf16.msra.mxu1 %v3269_v19 }
 0x247   :  { %3012 = vmatprep.subr.bf16.mxu1 %v3270_v52 }
 0x24a   :  { %3013 = vmatpush3.bf16.msra.mxu1 %v3270_v52 }
 0x292   :  { %v2806_v48 = vpop.f32.mrb[32].mxu1 }
 0x293   :  { %v2807_v46 = vpop.f32.mrb[33].mxu1 }
 0x294   :  { %v2808_v45 = vadd.f32 %v2807_v46, %v2806_v48  ;;  %v2809_v6 = vpop.f32.mrb[34].mxu1 }
 0x295   :  { %v2810_v55 = vpop.f32.mrb[35].mxu1 }
 0x296   :  { %v2811_v0 = vadd.f32 %v2810_v55, %v2809_v6  ;;  %v1967_v27 = vadd.f32 %v2808_v45, %v4434_v13 }
 0x298   :  { %v1970_v55 = vadd.f32 %v2811_v0, %v4434_v13 }
 0x29a   :  { %v2812_v39 = vpop.f32.mrb[36].mxu1 }
 0x29b   :  { %v2813_v47 = vpop.f32.mrb[37].mxu1 }
 0x29c   :  { %v4399_v37 = vadd.f32 %v2813_v47, %v2812_v39  ;;  %v2815_v28 = vpop.f32.mrb[38].mxu1 }
 0x29d   :  { %v2816_v22 = vpop.f32.mrb[39].mxu1 }
 0x29e   :  { %v4401_v9 = vadd.f32 %v2816_v22, %v2815_v28  ;;  %v1975_v0 = vadd.f32 %v4399_v37, %v4434_v13 }
 0x2a2   :  { %v2818_v41 = vpop.f32.mrb[40].mxu1 }
 0x2a3   :  { %v2819_v4 = vpop.f32.mrb[41].mxu1 }
 0x2a4   :  { %v4403_v8 = vadd.f32 %v2819_v4, %v2818_v41  ;;  %v2821_v59 = vpop.f32.mrb[42].mxu1 }
 0x2a5   :  { %v2822_v56 = vpop.f32.mrb[43].mxu1 }
 0x2a6   :  { %v4405_v36 = vadd.f32 %v2822_v56, %v2821_v59 }
 0x2aa   :  { %v2824_v29 = vpop.f32.mrb[44].mxu1 }
 0x2ab   :  { %v2825_v50 = vpop.f32.mrb[45].mxu1 }
 0x2ac   :  { %v4407_v2 = vadd.f32 %v2825_v50, %v2824_v29  ;;  %v2827_v12 = vpop.f32.mrb[46].mxu1 }
 0x2ad   :  { %v2828_v34 = vpop.f32.mrb[47].mxu1 }
 0x2ae   :  { %v4409_v31 = vadd.f32 %v2828_v34, %v2827_v12 }
 0x2b2   :  { %v2830_v14 = vpop.f32.mrb[48].mxu1 }
 0x2b3   :  { %v2831_v15 = vpop.f32.mrb[49].mxu1 }
 0x2b4   :  { %v4411_v62 = vadd.f32 %v2831_v15, %v2830_v14  ;;  %v2833_v21 = vpop.f32.mrb[50].mxu1 }
 0x2b5   :  { %v2834_v11 = vpop.f32.mrb[51].mxu1 }
 0x2b6   :  { %v4413_v16 = vadd.f32 %v2834_v11, %v2833_v21 }
 0x2ba   :  { %v2836_v61 = vpop.f32.mrb[52].mxu1 }
 0x2bb   :  { %v2837_v10 = vpop.f32.mrb[53].mxu1 }
 0x2bc   :  { %v4415_v60 = vadd.f32 %v2837_v10, %v2836_v61  ;;  %v2839_v3 = vpop.f32.mrb[54].mxu1 }
 0x2bd   :  { %v2840_v58 = vpop.f32.mrb[55].mxu1 }
 0x2be   :  { %v4417_v23 = vadd.f32 %v2840_v58, %v2839_v3 }
 0x2c2   :  { %v2842_v18 = vpop.f32.mrb[56].mxu1 }
 0x2c3   :  { %v2843_v30 = vpop.f32.mrb[57].mxu1 }
 0x2c4   :  { %v4419_v63 = vadd.f32 %v2843_v30, %v2842_v18  ;;  %v2845_v42 = vpop.f32.mrb[58].mxu1 }
 0x2c5   :  { %v2846_v7 = vpop.f32.mrb[59].mxu1 }
 0x2c6   :  { %v4421_v20 = vadd.f32 %v2846_v7, %v2845_v42 }
 0x2ca   :  { %v2848_v40 = vpop.f32.mrb[60].mxu1 }
 0x2cb   :  { %v2849_v33 = vpop.f32.mrb[61].mxu1 }
 0x2cc   :  { %v4423_v57 = vadd.f32 %v2849_v33, %v2848_v40  ;;  %v2851_v17 = vpop.f32.mrb[62].mxu1  ;;  %v1978_v40 = vadd.f32 %v4401_v9, %v4434_v13 }
 0x2cd   :  { %v2852_v38 = vpop.f32.mrb[63].mxu1 }
 0x2ce   :  { %v4428_v24 = vadd.f32 %v2852_v38, %v2851_v17 }
 0x2d2   :  { %v1853_v5 = vpop.f32.mrb[32].mxu0  ;;  %v2870_v1 = vpop.f32.mrb[64].mxu1 }
 0x2d3   :  { %v3030_v49 = vadd.f32 %v1853_v5, %v4431_v53  ;;  %v1855_v26 = vpop.f32.mrb[33].mxu0  ;;  %v2871_v44 = vpop.f32.mrb[65].mxu1 }
 0x2d4   :  { %v3031_v51 = vadd.f32 %v1855_v26, %v4437_v25  ;;  %v2872_v19 = vadd.f32 %v2871_v44, %v2870_v1  ;;  %v1857_v52 = vpop.f32.mrb[34].mxu0  ;;  %v2873_v48 = vpop.f32.mrb[66].mxu1 }
 0x2d5   :  { %v3032_v46 = vadd.f32 %v1857_v52, %v4431_v53  ;;  %v1859_v43 = vpop.f32.mrb[35].mxu0  ;;  %v2874_v6 = vpop.f32.mrb[67].mxu1  ;;  %v2126_v22 = vmax.f32 %v3030_v49, 0.0 }
 0x2d6   :  { %v2064_v39 = vadd.f32 %v2872_v19, %v1967_v27  ;;  %v3033_v47 = vadd.f32 %v1859_v43, %v4437_v25  ;;  %v2875_v28 = vadd.f32 %v2874_v6, %v2873_v48  ;;  %v2127_v4 = vmax.f32 %v3031_v51, 0.0 }
 0x2d7   :  { %v2129_v41 = vmax.f32 %v3032_v46, 0.0  ;;  %v1983_v48 = vadd.f32 %v4403_v8, %v4434_v13 }
 0x2d8   :  { %v2130_v59 = vmax.f32 %v3033_v47, 0.0  ;;  %v2067_v45 = vadd.f32 %v2875_v28, %v1970_v55  ;;  %v2128_v29 = vmax.f32 %v2064_v39, 0.0 }
 0x2d9   :  { %v2174_v56 = vpack.c.bf16 %v2129_v41, %v2126_v22  ;;  %v1986_v41 = vadd.f32 %v4405_v36, %v4434_v13 }
 0x2da   :  { %v2175_v50 = vpack.c.bf16 %v2130_v59, %v2127_v4  ;;  %v2131_v12 = vmax.f32 %v2067_v45, 0.0  ;;  %v1863_v34 = vpop.f32.mrb[36].mxu0  ;;  %v2876_v14 = vpop.f32.mrb[68].mxu1 }
 0x2db   :  { %v3034_v15 = vadd.f32 %v1863_v34, %v4431_v53  ;;  %v1865_v21 = vpop.f32.mrb[37].mxu0  ;;  %v2877_v11 = vpop.f32.mrb[69].mxu1 }
 0x2dc   :  { %v3035_v61 = vadd.f32 %v1865_v21, %v4437_v25  ;;  %v2878_v10 = vadd.f32 %v2877_v11, %v2876_v14  ;;  %v1867_v3 = vpop.f32.mrb[38].mxu0  ;;  %v2879_v58 = vpop.f32.mrb[70].mxu1  ;;  %2429 = vmatprep.mubr.bf16.mxu0 %v2175_v50  ;;  %v2176_v18 = vpack.c.bf16 %v2131_v12, %v2128_v29 }
 0x2dd   :  { %v3036_v30 = vadd.f32 %v1867_v3, %v4431_v53  ;;  %v1869_v42 = vpop.f32.mrb[39].mxu0  ;;  %v2880_v7 = vpop.f32.mrb[71].mxu1  ;;  %2430 = vmatmul.mubr.bf16.vlgmr.msra.gmra.mrb[64].mxu0 %v2174_v56  ;;  %v2132_v37 = vmax.f32 %v3034_v15, 0.0  ;;  %v1991_v3 = vadd.f32 %v4407_v2, %v4434_v13 }
 0x2de   :  { %v2072_v33 = vadd.f32 %v2878_v10, %v1975_v0  ;;  %v3037_v17 = vadd.f32 %v1869_v42, %v4437_v25  ;;  %v2881_v32 = vadd.f32 %v2880_v7, %v2879_v58  ;;  %3014 = vmatprep.mubr.bf16.mxu1 %v2176_v18  ;;  %v2133_v54 = vmax.f32 %v3035_v61, 0.0 }
 0x2df   :  { %v2135_v38 = vmax.f32 %v3036_v30, 0.0 }
 0x2e0   :  { %v2136_v35 = vmax.f32 %v3037_v17, 0.0  ;;  %v2075_v5 = vadd.f32 %v2881_v32, %v1978_v40  ;;  %v2134_v49 = vmax.f32 %v2072_v33, 0.0  ;;  %v1994_v32 = vadd.f32 %v4409_v31, %v4434_v13 }
 0x2e1   :  { %v2177_v1 = vpack.c.bf16 %v2135_v38, %v2132_v37 }
 0x2e2   :  { %v2178_v26 = vpack.c.bf16 %v2136_v35, %v2133_v54  ;;  %v2137_v44 = vmax.f32 %v2075_v5, 0.0  ;;  %v1873_v27 = vpop.f32.mrb[40].mxu0  ;;  %v2882_v51 = vpop.f32.mrb[72].mxu1 }
 0x2e3   :  { %v3038_v19 = vadd.f32 %v1873_v27, %v4431_v53  ;;  %v1875_v52 = vpop.f32.mrb[41].mxu0  ;;  %v2883_v9 = vpop.f32.mrb[73].mxu1 }
 0x2e4   :  { %v2179_v46 = vpack.c.bf16 %v2137_v44, %v2134_v49  ;;  %v3039_v43 = vadd.f32 %v1875_v52, %v4437_v25  ;;  %v2884_v6 = vadd.f32 %v2883_v9, %v2882_v51  ;;  %v1877_v55 = vpop.f32.mrb[42].mxu0  ;;  %v2885_v39 = vpop.f32.mrb[74].mxu1  ;;  %2437 = vmatprep.mubr.bf16.mxu0 %v2178_v26 }
 0x2e5   :  { %v3040_v47 = vadd.f32 %v1877_v55, %v4431_v53  ;;  %v1879_v28 = vpop.f32.mrb[43].mxu0  ;;  %v2886_v22 = vpop.f32.mrb[75].mxu1  ;;  %2438 = vmatmul.mubr.bf16.gmra.mrb[68].mxu0 %v2177_v1  ;;  %v2138_v8 = vmax.f32 %v3038_v19, 0.0 }
 0x2e6   :  { %v2080_v4 = vadd.f32 %v2884_v6, %v1983_v48  ;;  %v3041_v59 = vadd.f32 %v1879_v28, %v4437_v25  ;;  %v2887_v45 = vadd.f32 %v2886_v22, %v2885_v39  ;;  %3015 = vmatmul.mubr.bf16.vlgmr.msra.gmra.mrb[96].mxu1 %v2179_v46  ;;  %v2139_v29 = vmax.f32 %v3039_v43, 0.0 }
 0x2e7   :  { %v2141_v56 = vmax.f32 %v3040_v47, 0.0  ;;  %v1999_v46 = vadd.f32 %v4411_v62, %v4434_v13 }
 0x2e8   :  { %v2142_v50 = vmax.f32 %v3041_v59, 0.0  ;;  %v2083_v12 = vadd.f32 %v2887_v45, %v1986_v41  ;;  %v2140_v14 = vmax.f32 %v2080_v4, 0.0  ;;  %v2002_v4 = vadd.f32 %v4413_v16, %v4434_v13 }
 0x2e9   :  { %v2180_v34 = vpack.c.bf16 %v2141_v56, %v2138_v8 }
 0x2ea   :  { %v2181_v15 = vpack.c.bf16 %v2142_v50, %v2139_v29  ;;  %v2143_v21 = vmax.f32 %v2083_v12, 0.0  ;;  %v1883_v11 = vpop.f32.mrb[44].mxu0  ;;  %v2888_v0 = vpop.f32.mrb[76].mxu1 }
 0x2eb   :  { %v3042_v61 = vadd.f32 %v1883_v11, %v4431_v53  ;;  %v1885_v10 = vpop.f32.mrb[45].mxu0  ;;  %v2889_v36 = vpop.f32.mrb[77].mxu1 }
 0x2ec   :  { %v3043_v58 = vadd.f32 %v1885_v10, %v4437_v25  ;;  %v2890_v18 = vadd.f32 %v2889_v36, %v2888_v0  ;;  %v1887_v30 = vpop.f32.mrb[46].mxu0  ;;  %v2891_v42 = vpop.f32.mrb[78].mxu1  ;;  %2445 = vmatprep.mubr.bf16.mxu0 %v2181_v15  ;;  %v2182_v7 = vpack.c.bf16 %v2143_v21, %v2140_v14  ;;  %v2007_v36 = vadd.f32 %v4415_v60, %v4434_v13 }
 0x2ed   :  { %v3044_v40 = vadd.f32 %v1887_v30, %v4431_v53  ;;  %v1889_v33 = vpop.f32.mrb[47].mxu0  ;;  %v2892_v17 = vpop.f32.mrb[79].mxu1  ;;  %2446 = vmatmul.mubr.bf16.gmra.mrb[72].mxu0 %v2180_v34  ;;  %v2144_v2 = vmax.f32 %v3042_v61, 0.0 }
 0x2ee   :  { %v2088_v37 = vadd.f32 %v2890_v18, %v1991_v3  ;;  %v3045_v38 = vadd.f32 %v1889_v33, %v4437_v25  ;;  %v2893_v54 = vadd.f32 %v2892_v17, %v2891_v42  ;;  %3018 = vmatprep.mubr.bf16.mxu1 %v2182_v7  ;;  %v2145_v5 = vmax.f32 %v3043_v58, 0.0 }
 0x2ef   :  { %v2147_v35 = vmax.f32 %v3044_v40, 0.0  ;;  %v2010_v17 = vadd.f32 %v4417_v23, %v4434_v13 }
 0x2f0   :  { %v2148_v1 = vmax.f32 %v3045_v38, 0.0  ;;  %v2091_v49 = vadd.f32 %v2893_v54, %v1994_v32  ;;  %v2146_v44 = vmax.f32 %v2088_v37, 0.0 }
 0x2f1   :  { %v2183_v26 = vpack.c.bf16 %v2147_v35, %v2144_v2 }
 0x2f2   :  { %v2184_v27 = vpack.c.bf16 %v2148_v1, %v2145_v5  ;;  %v2149_v51 = vmax.f32 %v2091_v49, 0.0  ;;  %v1893_v19 = vpop.f32.mrb[48].mxu0  ;;  %v2894_v52 = vpop.f32.mrb[80].mxu1 }
 0x2f3   :  { %v3046_v9 = vadd.f32 %v1893_v19, %v4431_v53  ;;  %v1895_v48 = vpop.f32.mrb[49].mxu0  ;;  %v2895_v31 = vpop.f32.mrb[81].mxu1 }
 0x2f4   :  { %v3047_v43 = vadd.f32 %v1895_v48, %v4437_v25  ;;  %v2896_v6 = vadd.f32 %v2895_v31, %v2894_v52  ;;  %v1897_v55 = vpop.f32.mrb[50].mxu0  ;;  %v2897_v39 = vpop.f32.mrb[82].mxu1  ;;  %2453 = vmatprep.mubr.bf16.mxu0 %v2184_v27  ;;  %v2185_v47 = vpack.c.bf16 %v2149_v51, %v2146_v44 }
 0x2f5   :  { %v3048_v28 = vadd.f32 %v1897_v55, %v4431_v53  ;;  %v1899_v22 = vpop.f32.mrb[51].mxu0  ;;  %v2898_v41 = vpop.f32.mrb[83].mxu1  ;;  %2454 = vmatmul.mubr.bf16.gmra.mrb[76].mxu0 %v2183_v26  ;;  %v2150_v62 = vmax.f32 %v3046_v9, 0.0  ;;  %v2015_v9 = vadd.f32 %v4419_v63, %v4434_v13 }
 0x2f6   :  { %v2096_v59 = vadd.f32 %v2896_v6, %v1999_v46  ;;  %v3049_v45 = vadd.f32 %v1899_v22, %v4437_v25  ;;  %v2899_v8 = vadd.f32 %v2898_v41, %v2897_v39  ;;  %3019 = vmatmul.mubr.bf16.gmra.mrb[100].mxu1 %v2185_v47  ;;  %v2151_v29 = vmax.f32 %v3047_v43, 0.0 }
 0x2f7   :  { %v2153_v56 = vmax.f32 %v3048_v28, 0.0  ;;  %v2018_v28 = vadd.f32 %v4421_v20, %v4434_v13 }
 0x2f8   :  { %v2154_v50 = vmax.f32 %v3049_v45, 0.0  ;;  %v2099_v12 = vadd.f32 %v2899_v8, %v2002_v4  ;;  %v2152_v14 = vmax.f32 %v2096_v59, 0.0 }
 0x2f9   :  { %v2186_v34 = vpack.c.bf16 %v2153_v56, %v2150_v62 }
 0x2fa   :  { %v2187_v15 = vpack.c.bf16 %v2154_v50, %v2151_v29  ;;  %v2155_v21 = vmax.f32 %v2099_v12, 0.0  ;;  %v1903_v11 = vpop.f32.mrb[52].mxu0  ;;  %v2900_v0 = vpop.f32.mrb[84].mxu1 }
 0x2fb   :  { %v3050_v61 = vadd.f32 %v1903_v11, %v4431_v53  ;;  %v1905_v10 = vpop.f32.mrb[53].mxu0  ;;  %v2901_v16 = vpop.f32.mrb[85].mxu1  ;;  %v2023_v11 = vadd.f32 %v4423_v57, %v4434_v13 }
 0x2fc   :  { %v3051_v3 = vadd.f32 %v1905_v10, %v4437_v25  ;;  %v2902_v58 = vadd.f32 %v2901_v16, %v2900_v0  ;;  %v1907_v18 = vpop.f32.mrb[54].mxu0  ;;  %v2903_v30 = vpop.f32.mrb[86].mxu1  ;;  %2461 = vmatprep.mubr.bf16.mxu0 %v2187_v15  ;;  %v2188_v42 = vpack.c.bf16 %v2155_v21, %v2152_v14 }
 0x2fd   :  { %v3052_v7 = vadd.f32 %v1907_v18, %v4431_v53  ;;  %v1909_v40 = vpop.f32.mrb[55].mxu0  ;;  %v2904_v33 = vpop.f32.mrb[87].mxu1  ;;  %2462 = vmatmul.mubr.bf16.gmra.mrb[80].mxu0 %v2186_v34  ;;  %v2156_v60 = vmax.f32 %v3050_v61, 0.0 }
 0x2fe   :  { %v2104_v32 = vadd.f32 %v2902_v58, %v2007_v36  ;;  %v3053_v37 = vadd.f32 %v1909_v40, %v4437_v25  ;;  %v2905_v38 = vadd.f32 %v2904_v33, %v2903_v30  ;;  %3022 = vmatprep.mubr.bf16.mxu1 %v2188_v42  ;;  %v2157_v2 = vmax.f32 %v3051_v3, 0.0 }
 0x2ff   :  { %v2159_v54 = vmax.f32 %v3052_v7, 0.0  ;;  %v2026_v30 = vadd.f32 %v4428_v24, %v4434_v13 }
 0x300   :  { %v2160_v35 = vmax.f32 %v3053_v37, 0.0  ;;  %v2107_v5 = vadd.f32 %v2905_v38, %v2010_v17  ;;  %v2158_v49 = vmax.f32 %v2104_v32, 0.0 }
 0x301   :  { %v2189_v1 = vpack.c.bf16 %v2159_v54, %v2156_v60 }
 0x302   :  { %v2190_v26 = vpack.c.bf16 %v2160_v35, %v2157_v2  ;;  %v2161_v44 = vmax.f32 %v2107_v5, 0.0  ;;  %v1913_v27 = vpop.f32.mrb[56].mxu0  ;;  %v2906_v51 = vpop.f32.mrb[88].mxu1 }
 0x303   :  { %v3054_v19 = vadd.f32 %v1913_v27, %v4431_v53  ;;  %v1915_v52 = vpop.f32.mrb[57].mxu0  ;;  %v2907_v23 = vpop.f32.mrb[89].mxu1 }
 0x304   :  { %v3055_v48 = vadd.f32 %v1915_v52, %v4437_v25  ;;  %v2908_v31 = vadd.f32 %v2907_v23, %v2906_v51  ;;  %v1917_v46 = vpop.f32.mrb[58].mxu0  ;;  %v2909_v43 = vpop.f32.mrb[90].mxu1  ;;  %2469 = vmatprep.mubr.bf16.mxu0 %v2190_v26  ;;  %v2191_v6 = vpack.c.bf16 %v2161_v44, %v2158_v49  ;;  %v4504_v49 = vld [vmem:[%s4542_s8] ss:$0 sm:$0xff]  ;;  %s3391_s8 = smov [#allocation7]  }
 0x305   :  { %v3056_v55 = vadd.f32 %v1917_v46, %v4431_v53  ;;  %v1919_v39 = vpop.f32.mrb[59].mxu0  ;;  %v2910_v47 = vpop.f32.mrb[91].mxu1  ;;  %2470 = vmatmul.mubr.bf16.gmra.mrb[84].mxu0 %v2189_v1  ;;  %v2162_v63 = vmax.f32 %v3054_v19, 0.0  ;;  %s2628_s20 = sshll.u32 %s3391_s8, 4  ;;  %s2629_s20 = int_to_ptr.vmem [resolvable:$true] %s2628_s20 }
 0x306   :  { %v2112_v22 = vadd.f32 %v2908_v31, %v2015_v9  ;;  %v3057_v41 = vadd.f32 %v1919_v39, %v4437_v25  ;;  %v2911_v4 = vadd.f32 %v2910_v47, %v2909_v43  ;;  %3023 = vmatmul.mubr.bf16.gmra.mrb[104].mxu1 %v2191_v6  ;;  %v2163_v45 = vmax.f32 %v3055_v48, 0.0  ;;  %s3355_s7 = scalar_lea.vmem %s2629_s20, 2048  ;;  %p3360_p3 = scmp.lt.s32.totalorder %s2629_s20, %s2629_s20 }
 0x307   :  { %v2165_v59 = vmax.f32 %v3056_v55, 0.0  ;;  %p3356_p2 = scmp.ne.s32.totalorder %s2629_s20, %s3355_s7  ;;  %p3361_p4 = scmp.lt.s32.totalorder %s3355_s7, %s3355_s7 }
 0x308   :  { %v2166_v8 = vmax.f32 %v3057_v41, 0.0  ;;  %v2115_v62 = vadd.f32 %v2911_v4, %v2018_v28  ;;  %v2164_v29 = vmax.f32 %v2112_v22, 0.0 }
 0x309   :  { %v2192_v56 = vpack.c.bf16 %v2165_v59, %v2162_v63  ;;  %p3362_p5 = por %p3361_p4, %p3360_p3 }
 0x30a   :  { %v2193_v50 = vpack.c.bf16 %v2166_v8, %v2163_v45  ;;  %v2167_v12 = vmax.f32 %v2115_v62, 0.0  ;;  %v1923_v34 = vpop.f32.mrb[60].mxu0  ;;  %v2912_v14 = vpop.f32.mrb[92].mxu1 }
 0x30b   :  { %v3058_v15 = vadd.f32 %v1923_v34, %v4431_v53  ;;  %v1925_v21 = vpop.f32.mrb[61].mxu0  ;;  %v2913_v20 = vpop.f32.mrb[93].mxu1  ;;  %p3363_p6 = pnand %p3362_p5, %p3356_p2 }
 0x30c   :  { %v3059_v0 = vadd.f32 %v1925_v21, %v4437_v25  ;;  %v2914_v61 = vadd.f32 %v2913_v20, %v2912_v14  ;;  %v1927_v10 = vpop.f32.mrb[62].mxu0  ;;  %v2915_v16 = vpop.f32.mrb[94].mxu1  ;;  %2477 = vmatprep.mubr.bf16.mxu0 %v2193_v50  ;;  %v2194_v36 = vpack.c.bf16 %v2167_v12, %v2164_v29 }
 0x30d   :  { %v3060_v3 = vadd.f32 %v1927_v10, %v4431_v53  ;;  %v1929_v58 = vpop.f32.mrb[63].mxu0  ;;  %v2916_v18 = vpop.f32.mrb[95].mxu1  ;;  %2478 = vmatmul.mubr.bf16.gmra.mrb[88].mxu0 %v2192_v56  ;;  %v2168_v57 = vmax.f32 %v3058_v15, 0.0 }
 0x30e   :  { %v2120_v42 = vadd.f32 %v2914_v61, %v2023_v11  ;;  %v3061_v7 = vadd.f32 %v1929_v58, %v4437_v25  ;;  %v2917_v40 = vadd.f32 %v2916_v18, %v2915_v16  ;;  %3026 = vmatprep.mubr.bf16.mxu1 %v2194_v36  ;;  %v2169_v17 = vmax.f32 %v3059_v0, 0.0 }
 0x30f   :  { %v2171_v33 = vmax.f32 %v3060_v3, 0.0 }
 0x310   :  { %v2172_v32 = vmax.f32 %v3061_v7, 0.0  ;;  %v2123_v37 = vadd.f32 %v2917_v40, %v2026_v30  ;;  %v2170_v60 = vmax.f32 %v2120_v42, 0.0 }
 0x311   :  { %v2195_v38 = vpack.c.bf16 %v2171_v33, %v2168_v57 }
 0x312   :  { %v2196_v54 = vpack.c.bf16 %v2172_v32, %v2169_v17  ;;  %v2173_v53 = vmax.f32 %v2123_v37, 0.0 }
 0x314   :  { %2485 = vmatprep.mubr.bf16.mxu0 %v2196_v54  ;;  %v2197_v2 = vpack.c.bf16 %v2173_v53, %v2170_v60 }
 0x315   :  { %2486 = vmatmul.mubr.bf16.gmra.mrb[92].mxu0 %v2195_v38 }
 0x316   :  { %3027 = vmatmul.mubr.bf16.gmra.mrb[108].mxu1 %v2197_v2 }
 0x3b0   :  { %v2934_v35 = vpop.f32.mrb[64].mxu0 }
 0x3b1   :  { %v2935_v24 = vpop.f32.mrb[65].mxu0 }
 0x3b2   :  { %v2936_v13 = vadd.f32 %v2935_v24, %v2934_v35  ;;  %v2937_v5 = vpop.f32.mrb[66].mxu0 }
 0x3b3   :  { %v2938_v25 = vpop.f32.mrb[67].mxu0 }
 0x3b4   :  { %v2939_v1 = vadd.f32 %v2938_v25, %v2937_v5  ;;  %v2432_v51 = vadd.f32 %v2936_v13, %v4504_v49 }
 0x3b6   :  { %v2435_v46 = vadd.f32 %v2939_v1, %v4504_v49 }
 0x3b8   :  { %v2940_v26 = vpop.f32.mrb[68].mxu0 }
 0x3b9   :  { %v2941_v44 = vpop.f32.mrb[69].mxu0  ;;  %v3016_v27 = vpop.f32.mrb[96].mxu1 }
 0x3ba   :  { %v2942_v19 = vadd.f32 %v2941_v44, %v2940_v26  ;;  %v2943_v52 = vpop.f32.mrb[70].mxu0  ;;  %v2528_v23 = vpop.f32.mrb[97].mxu1 }
 0x3bb   :  { %v2529_v9 = vadd.f32 %v2528_v23, %v2432_v51  ;;  %v2944_v48 = vpop.f32.mrb[71].mxu0  ;;  %v3017_v31 = vpop.f32.mrb[98].mxu1 }
 0x3bc   :  { %v2440_v43 = vadd.f32 %v2942_v19, %v4504_v49  ;;  %v2945_v6 = vadd.f32 %v2944_v48, %v2943_v52  ;;  %v2531_v55 = vpop.f32.mrb[99].mxu1 }
 0x3bd   :  { %3279 = vtanh.f32 %v2529_v9  ;;  %v2532_v39 = vadd.f32 %v2531_v55, %v2435_v46 }
 0x3be   :  { %v2537_v47 = vadd.f32 %v3016_v27, %v2440_v43  ;;  %v2443_v28 = vadd.f32 %v2945_v6, %v4504_v49 }
 0x3bf   :  { %3281 = vtanh.f32 %v2532_v39 }
 0x3c0   :  { %3283 = vtanh.f32 %v2537_v47  ;;  %v2540_v22 = vadd.f32 %v3017_v31, %v2443_v28  ;;  %v2946_v41 = vpop.f32.mrb[72].mxu0 }
 0x3c1   :  { %v2947_v4 = vpop.f32.mrb[73].mxu0 }
 0x3c2   :  { %3285 = vtanh.f32 %v2540_v22  ;;  %v2948_v63 = vadd.f32 %v2947_v4, %v2946_v41  ;;  %v2949_v59 = vpop.f32.mrb[74].mxu0 }
 0x3c3   :  { %v2950_v45 = vpop.f32.mrb[75].mxu0 }
 0x3c4   :  { %v2951_v8 = vadd.f32 %v2950_v45, %v2949_v59  ;;  %v2448_v34 = vadd.f32 %v2948_v63, %v4504_v49 }
 0x3c6   :  { %v2451_v10 = vadd.f32 %v2951_v8, %v4504_v49 }
 0x3c7   :  { %v3280_v62 = vpop.eup %3279 }
 0x3c8   :  { %2607 = vst [vmem:[#allocation7] sm:$0xff] %v3280_v62  ;;  %v2952_v56 = vpop.f32.mrb[76].mxu0 }
 0x3c9   :  { %v3282_v29 = vpop.eup %3281  ;;  %v2953_v50 = vpop.f32.mrb[77].mxu0 }
 0x3ca   :  { %v3020_v12 = vpop.f32.mrb[100].mxu1  ;;  %v3284_v14 = vpop.eup %3283  ;;  %2608 = vst [vmem:[#allocation7 + $0x8] sm:$0xff] %v3282_v29  ;;  %v2954_v15 = vadd.f32 %v2953_v50, %v2952_v56 }
 0x3cb   :  { %v2955_v21 = vpop.f32.mrb[78].mxu0  ;;  %v2544_v20 = vpop.f32.mrb[101].mxu1  ;;  %2609 = vst [vmem:[#allocation7 + $0x10] sm:$0xff] %v3284_v14 }
 0x3cc   :  { %v2545_v11 = vadd.f32 %v2544_v20, %v2448_v34  ;;  %v2956_v0 = vpop.f32.mrb[79].mxu0  ;;  %v3021_v61 = vpop.f32.mrb[102].mxu1  ;;  %v2456_v36 = vadd.f32 %v2954_v15, %v4504_v49 }
 0x3cd   :  { %v3286_v16 = vpop.eup %3285  ;;  %v2957_v3 = vadd.f32 %v2956_v0, %v2955_v21  ;;  %v2547_v58 = vpop.f32.mrb[103].mxu1 }
 0x3ce   :  { %2610 = vst [vmem:[#allocation7 + $0x18] sm:$0xff] %v3286_v16  ;;  %3287 = vtanh.f32 %v2545_v11  ;;  %v2548_v18 = vadd.f32 %v2547_v58, %v2451_v10  ;;  %v2553_v30 = vadd.f32 %v3020_v12, %v2456_v36 }
 0x3cf   :  { %v2459_v42 = vadd.f32 %v2957_v3, %v4504_v49 }
 0x3d0   :  { %3289 = vtanh.f32 %v2548_v18  ;;  %v2958_v40 = vpop.f32.mrb[80].mxu0 }
 0x3d1   :  { %3291 = vtanh.f32 %v2553_v30  ;;  %v2556_v7 = vadd.f32 %v3021_v61, %v2459_v42  ;;  %v2959_v57 = vpop.f32.mrb[81].mxu0 }
 0x3d2   :  { %v2960_v33 = vadd.f32 %v2959_v57, %v2958_v40  ;;  %v2961_v17 = vpop.f32.mrb[82].mxu0 }
 0x3d3   :  { %3293 = vtanh.f32 %v2556_v7  ;;  %v2962_v32 = vpop.f32.mrb[83].mxu0 }
 0x3d4   :  { %v2963_v37 = vadd.f32 %v2962_v32, %v2961_v17  ;;  %v2464_v35 = vadd.f32 %v2960_v33, %v4504_v49 }
 0x3d6   :  { %v2467_v27 = vadd.f32 %v2963_v37, %v4504_v49 }
 0x3d8   :  { %v3288_v38 = vpop.eup %3287  ;;  %v2964_v60 = vpop.f32.mrb[84].mxu0 }
 0x3d9   :  { %2611 = vst [vmem:[#allocation7 + $0x20] sm:$0xff] %v3288_v38  ;;  %v2965_v53 = vpop.f32.mrb[85].mxu0  ;;  %v3024_v2 = vpop.f32.mrb[104].mxu1 }
 0x3da   :  { %v3290_v54 = vpop.eup %3289  ;;  %v2966_v13 = vadd.f32 %v2965_v53, %v2964_v60  ;;  %v2967_v5 = vpop.f32.mrb[86].mxu0 }
 0x3db   :  { %v3292_v24 = vpop.eup %3291  ;;  %2612 = vst [vmem:[#allocation7 + $0x28] sm:$0xff] %v3290_v54  ;;  %v2560_v25 = vpop.f32.mrb[105].mxu1 }
 0x3dc   :  { %2613 = vst [vmem:[#allocation7 + $0x30] sm:$0xff] %v3292_v24  ;;  %v2561_v1 = vadd.f32 %v2560_v25, %v2464_v35  ;;  %v2968_v26 = vpop.f32.mrb[87].mxu0  ;;  %v3025_v44 = vpop.f32.mrb[106].mxu1  ;;  %v2472_v19 = vadd.f32 %v2966_v13, %v4504_v49 }
 0x3dd   :  { %v3294_v51 = vpop.eup %3293  ;;  %v2969_v52 = vadd.f32 %v2968_v26, %v2967_v5  ;;  %v2563_v23 = vpop.f32.mrb[107].mxu1 }
 0x3de   :  { %2614 = vst [vmem:[#allocation7 + $0x38] sm:$0xff] %v3294_v51  ;;  %3295 = vtanh.f32 %v2561_v1  ;;  %v2564_v9 = vadd.f32 %v2563_v23, %v2467_v27  ;;  %v2569_v48 = vadd.f32 %v3024_v2, %v2472_v19 }
 0x3df   :  { %v2475_v31 = vadd.f32 %v2969_v52, %v4504_v49 }
 0x3e0   :  { %3297 = vtanh.f32 %v2564_v9  ;;  %v2970_v43 = vpop.f32.mrb[88].mxu0 }
 0x3e1   :  { %3299 = vtanh.f32 %v2569_v48  ;;  %v2572_v46 = vadd.f32 %v3025_v44, %v2475_v31  ;;  %v2971_v6 = vpop.f32.mrb[89].mxu0 }
 0x3e2   :  { %v2972_v55 = vadd.f32 %v2971_v6, %v2970_v43  ;;  %v2973_v39 = vpop.f32.mrb[90].mxu0 }
 0x3e3   :  { %3301 = vtanh.f32 %v2572_v46  ;;  %v2974_v47 = vpop.f32.mrb[91].mxu0 }
 0x3e4   :  { %v2975_v28 = vadd.f32 %v2974_v47, %v2973_v39  ;;  %v2480_v45 = vadd.f32 %v2972_v55, %v4504_v49 }
 0x3e6   :  { %v2483_v14 = vadd.f32 %v2975_v28, %v4504_v49 }
 0x3e8   :  { %v3296_v22 = vpop.eup %3295  ;;  %v2976_v41 = vpop.f32.mrb[92].mxu0 }
 0x3e9   :  { %2615 = vst [vmem:[#allocation7 + $0x40] sm:$0xff] %v3296_v22  ;;  %v2977_v63 = vpop.f32.mrb[93].mxu0  ;;  %v3028_v59 = vpop.f32.mrb[108].mxu1 }
 0x3ea   :  { %v3298_v4 = vpop.eup %3297  ;;  %v2978_v62 = vadd.f32 %v2977_v63, %v2976_v41  ;;  %v2979_v56 = vpop.f32.mrb[94].mxu0 }
 0x3eb   :  { %v3300_v8 = vpop.eup %3299  ;;  %2616 = vst [vmem:[#allocation7 + $0x48] sm:$0xff] %v3298_v4  ;;  %v2576_v29 = vpop.f32.mrb[109].mxu1 }
 0x3ec   :  { %2617 = vst [vmem:[#allocation7 + $0x50] sm:$0xff] %v3300_v8  ;;  %v2577_v50 = vadd.f32 %v2576_v29, %v2480_v45  ;;  %v2980_v12 = vpop.f32.mrb[95].mxu0  ;;  %v3029_v34 = vpop.f32.mrb[110].mxu1  ;;  %v2488_v21 = vadd.f32 %v2978_v62, %v4504_v49 }
 0x3ed   :  { %v3302_v15 = vpop.eup %3301  ;;  %v2981_v20 = vadd.f32 %v2980_v12, %v2979_v56  ;;  %v2579_v11 = vpop.f32.mrb[111].mxu1 }
 0x3ee   :  { %2618 = vst [vmem:[#allocation7 + $0x58] sm:$0xff] %v3302_v15  ;;  %3303 = vtanh.f32 %v2577_v50  ;;  %v2580_v0 = vadd.f32 %v2579_v11, %v2483_v14  ;;  %v2585_v61 = vadd.f32 %v3028_v59, %v2488_v21 }
 0x3ef   :  { %v2491_v10 = vadd.f32 %v2981_v20, %v4504_v49 }
 0x3f0   :  { %3305 = vtanh.f32 %v2580_v0 }
 0x3f1   :  { %3307 = vtanh.f32 %v2585_v61  ;;  %v2588_v16 = vadd.f32 %v3029_v34, %v2491_v10 }
 0x3f3   :  { %3309 = vtanh.f32 %v2588_v16 }
 0x3f8   :  { %v3304_v36 = vpop.eup %3303 }
 0x3f9   :  { %2619 = vst [vmem:[#allocation7 + $0x60] sm:$0xff] %v3304_v36 }
 0x3fa   :  { %v3306_v3 = vpop.eup %3305 }
 0x3fb   :  { %v3308_v58 = vpop.eup %3307  ;;  %2620 = vst [vmem:[#allocation7 + $0x68] sm:$0xff] %v3306_v3 }
 0x3fc   :  { %2621 = vst [vmem:[#allocation7 + $0x70] sm:$0xff] %v3308_v58 }
 0x3fd   :  { %v3310_v18 = vpop.eup %3309 }
 0x3fe   :  { %2622 = vst [vmem:[#allocation7 + $0x78] sm:$0xff] %v3310_v18 }
 0x3ff   :  { %3366 = shalt.err (!%p3363_p6)
}
 0x400   :  { %s3367_s23 = scalar_lea.hbm %s4543_s9, 2048 }
 0x401   :  { %p3368_p7 = scmp.ne.s32.totalorder %s4543_s9, %s3367_s23  ;;  %p3371_p8 = scmp.lt.u32.totalorder %s3367_s23, %s4543_s9 }
 0x403   :  { %p3373_p9 = pnand %p3371_p8, %p3368_p7 }
 0x405   :  { %3376 = shalt.err (!%p3373_p9)
}
 0x406   :  { %s3392_s27 = smov 128   ;;  %s3393_s28 = smov 8  }
 0x407   :  { %2634 = dma.vmem_to_hbm [thread:$0]  %s2629_s20, 2048, %s4543_s9, [#allocation4], %s3392_s27, %s3392_s27, %s3393_s28  }
 0x408   :  { %3381 = dma.done.wait [#allocation4], 2048  }
 0x409   :  { %3382 = vsyncadd [#allocation4], 4294965248 }
 0x40a   :  { %2638 = vsyncpa [#allocation3], 1 }
 0x40b   :  { %2639 = vsyncpa [#allocation6], 1 }
 0x40c   :  { %2640 = vsyncpa [#allocation4], 1 }

</bundles_post_ra>
